<compile_context>
chip_gen: v7x
topology: tpu7x:2x2x1
jax: 0.10.0
libtpu: 0.0.40
codegen_flags: <defaults>
</compile_context>

<pallas_src>
import functools
import math

import jax
import jax.numpy as jnp
from jax.experimental import pallas as pl
from jax.experimental.pallas import tpu as pltpu


# MXU operand dtype.  float32 by default so the kernel runs under both the
# compiled Mosaic path and the Pallas interpreter / CPU executor (which rejects
# bf16 x bf16 = f32 dots).  On real v6e/v7x hardware, jnp.bfloat16 doubles MXU
# throughput and halves weight DMA bytes; all elementwise math stays float32.
MXU_DTYPE = jnp.float32


# ----------------------------------------------------------------------------
# Pallas kernel: the full encoder stack, grid = (batch blocks, layer)
# ----------------------------------------------------------------------------
def _layer_norm(x, gamma, beta, eps=1e-5):
    # nn.LayerNorm over the last dim: biased variance, eps=1e-5, affine params.
    mean = jnp.mean(x, axis=-1, keepdims=True)
    var = jnp.mean((x - mean) ** 2, axis=-1, keepdims=True)
    return (x - mean) * jax.lax.rsqrt(var + eps) * gamma + beta


def encoder_stack_kernel(x_ref, wqkv_ref, wo_ref, g1_ref, be1_ref,
                         w1_ref, b1_ref, w2_ref, b2_ref, g2_ref, be2_ref,
                         o_ref, *, num_heads, mxu_dtype):
    """One grid step = (batch block bb, layer l).

    The layer axis is the trailing ("arbitrary") grid axis.  The output block
    index is constant over l, so the (Bblk, S, E) activation stays resident in
    the output's VMEM buffer and is the carried state between layers; it is
    written back to HBM only once per batch block.  Per-layer weight blocks
    are streamed by the BlockSpec pipeline and amortized over Bblk sequences.
    """
    l = pl.program_id(1)
    Bblk, S, E = x_ref.shape
    H = num_heads
    dh = E // H
    M = Bblk * S
    scale = 1.0 / math.sqrt(dh)          # scores scaled by 1/sqrt(d_head)

    # Seed the carried activation from the embedded input at the first layer.
    @pl.when(l == 0)
    def _():
        o_ref[...] = x_ref[...]

    x = o_ref[...].reshape(M, E)          # (M, E) float32, fat M = Bblk*S

    def mm(a, w):                          # MXU matmul, f32 accumulation
        return jnp.dot(a.astype(mxu_dtype), w.astype(mxu_dtype),
                       preferred_element_type=jnp.float32)

    # ---- fused Q/K/V projection: one (M,E)@(E,3E) matmul --------------------
    qkv = mm(x, wqkv_ref[0])               # (M, 3E) float32
    q2 = qkv[:, :E] * scale                # fold 1/sqrt(dh) into Q (M*E elems)
    k2 = qkv[:, E:2 * E]
    v2 = qkv[:, 2 * E:]

    # Head concat folded into Wo:  attn = sum_h (P_h @ V_h) @ Wo[h*dh:(h+1)*dh]
    wo_r = wo_ref[0].reshape(H, dh, E).astype(mxu_dtype)    # (H, dh, E)

    # ---- per-sequence attention, all heads batched per einsum ---------------
    attn_rows = []
    for b in range(Bblk):                  # static unroll over the batch block
        r0 = b * S
        qb = q2[r0:r0 + S].reshape(S, H, dh)
        kb = k2[r0:r0 + S].reshape(S, H, dh)
        vb = v2[r0:r0 + S].reshape(S, H, dh)
        # trailing-dh contraction == MXU rhs-transposed matmul, no transposes
        s = jnp.einsum('qhd,khd->hqk', qb.astype(mxu_dtype),
                       kb.astype(mxu_dtype),
                       preferred_element_type=jnp.float32)   # (H, S, S) f32
        p = jnp.exp(s - jnp.max(s, axis=-1, keepdims=True))  # unnormalized
        inv = 1.0 / jnp.sum(p, axis=-1, keepdims=True)       # (H, S, 1) only
        o_h = jnp.einsum('hqk,khd->hqd', p.astype(mxu_dtype),
                         vb.astype(mxu_dtype),
                         preferred_element_type=jnp.float32)  # (H, S, dh)
        o_e = jnp.einsum('hqd,hde->hqe', (o_h * inv).astype(mxu_dtype), wo_r,
                         preferred_element_type=jnp.float32)  # (H, S, E)
        attn_rows.append(jnp.sum(o_e, axis=0))                # (S, E)
    attn = jnp.concatenate(attn_rows, axis=0)                 # (M, E)

    # ---- AddNorm 1 -----------------------------------------------------------
    y1 = _layer_norm(attn + x, g1_ref[0], be1_ref[0])

    # ---- position-wise FFN: relu(y1 @ W1 + b1) @ W2 + b2 ---------------------
    h1 = jnp.maximum(mm(y1, w1_ref[0]) + b1_ref[0], 0.0)
    f = mm(h1, w2_ref[0]) + b2_ref[0]

    # ---- AddNorm 2 -----------------------------------------------------------
    y2 = _layer_norm(f + y1, g2_ref[0], be2_ref[0])

    o_ref[...] = y2.reshape(Bblk, S, E)    # carried to next layer; final result


def _pick_batch_block(batch, seq, target_rows=512):
    """Largest divisor of `batch` keeping Bblk*S <= target_rows (fat MXU M dim
    while bounding VMEM).  On v7x, prefer leaving the parallel grid extent >= 2
    when batch allows it so both TensorCores get work."""
    best = 1
    for cand in range(1, batch + 1):
        if batch % cand == 0 and cand * seq <= max(target_rows, seq):
            best = cand
    return best


def encoder_stack(x, stack, num_heads, block_b=None):
    """x: (B, S, E) float32 -> (B, S, E) float32.  All layers in one call."""
    B, S, E = x.shape
    L = stack["wqkv"].shape[0]
    mxu_dtype = stack["wqkv"].dtype
    if block_b is None:
        block_b = _pick_batch_block(B, S)
    assert B % block_b == 0

    order = ("wqkv", "wo", "g1", "be1", "w1", "b1", "w2", "b2", "g2", "be2")
    act_spec = pl.BlockSpec((block_b, S, E), lambda b, l: (b, 0, 0))
    layer_specs = [
        pl.BlockSpec((1,) + stack[name].shape[1:], lambda b, l: (l, 0, 0))
        for name in order]

    kernel = functools.partial(encoder_stack_kernel,
                               num_heads=num_heads, mxu_dtype=mxu_dtype)
    return pl.pallas_call(
        kernel,
        out_shape=jax.ShapeDtypeStruct((B, S, E), jnp.float32),
        grid=(B // block_b, L),
        in_specs=[act_spec] + layer_specs,
        out_specs=pl.BlockSpec((block_b, S, E), lambda b, l: (b, 0, 0)),
        compiler_params=pltpu.CompilerParams(
            dimension_semantics=("parallel", "arbitrary"),
            vmem_limit_bytes=64 * 1024 * 1024),   # v5e scoped default is 16 MiB
    )(x, *[stack[name] for name in order])


# ----------------------------------------------------------------------------
# Glue: positional encoding + embedding lookup (plain JAX)
# ----------------------------------------------------------------------------
def positional_encoding(seq_len, d, max_seq_len=None):
    if max_seq_len is None:
        max_seq_len = seq_len
    max_seq_len = int(max_seq_len // seq_len * seq_len)
    step = max_seq_len // seq_len
    half = (d + 1) // 2
    i = jnp.arange(0, max_seq_len, step, dtype=jnp.float32)[:, None]   # (l, 1)
    j = jnp.arange(half, dtype=jnp.float32)[None, :]                   # (1, half)
    T = i / jnp.power(10000.0, 2.0 * j / d)                            # (l, half)
    P = jnp.zeros((1, seq_len, d), jnp.float32)
    if d % 2 != 0:
        P = P.at[0, :, 1::2].set(jnp.cos(T[:, :-1]))
    else:
        P = P.at[0, :, 1::2].set(jnp.cos(T))
    P = P.at[0, :, 0::2].set(jnp.sin(T))
    return P


def transformer_encoder(tokens, params, *, num_heads, max_seq_len=None):
    # word embedding lookup (gather) + scale + positional encoding
    emb = params["embed"][tokens]                      # (B, S, E)
    E = emb.shape[-1]
    P = positional_encoding(emb.shape[1], E, max_seq_len)
    y = emb * math.sqrt(E) + P
    # dropout: identity (eval)
    return encoder_stack(y, params["stack"], num_heads)


# ----------------------------------------------------------------------------
# Deterministic parameter init (stacked per-layer weights)
# ----------------------------------------------------------------------------
def init_params(key, vocab_size, embed_size, ffn_hidden, n_layers,
                mxu_dtype=MXU_DTYPE):
    k_embed, *k_layers = jax.random.split(key, 1 + n_layers)
    embed = 0.02 * jax.random.normal(k_embed, (vocab_size, embed_size),
                                     jnp.float32)

    wqkv, wo, w1, w2 = [], [], [], []
    s = 0.05
    for kl in k_layers:
        kq, kk, kv, ko, k1, k2 = jax.random.split(kl, 6)
        wq = s * jax.random.normal(kq, (embed_size, embed_size), jnp.float32)
        wk = s * jax.random.normal(kk, (embed_size, embed_size), jnp.float32)
        wv = s * jax.random.normal(kv, (embed_size, embed_size), jnp.float32)
        wqkv.append(jnp.concatenate([wq, wk, wv], axis=1))            # (E, 3E)
        wo.append(s * jax.random.normal(ko, (embed_size, embed_size), jnp.float32))
        w1.append(s * jax.random.normal(k1, (embed_size, ffn_hidden), jnp.float32))
        w2.append(s * jax.random.normal(k2, (ffn_hidden, embed_size), jnp.float32))

    L, E, F = n_layers, embed_size, ffn_hidden
    stack = {
        # matmul weights stored in the MXU dtype (f32 default; bf16 on real HW)
        "wqkv": jnp.stack(wqkv).astype(mxu_dtype),     # (L, E, 3E)
        "wo":   jnp.stack(wo).astype(mxu_dtype),       # (L, E, E)
        "w1":   jnp.stack(w1).astype(mxu_dtype),       # (L, E, F)
        "w2":   jnp.stack(w2).astype(mxu_dtype),       # (L, F, E)
        # biases / LayerNorm affine params stay f32 (elementwise path)
        "b1":   jnp.zeros((L, 1, F), jnp.float32),
        "b2":   jnp.zeros((L, 1, E), jnp.float32),
        "g1":   jnp.ones((L, 1, E), jnp.float32),
        "be1":  jnp.zeros((L, 1, E), jnp.float32),
        "g2":   jnp.ones((L, 1, E), jnp.float32),
        "be2":  jnp.zeros((L, 1, E), jnp.float32),
    }
    return {"embed": embed, "stack": stack}


# ----------------------------------------------------------------------------
if __name__ == "__main__":
    # small config consistent with the module's forward
    VOCAB = 50
    EMBED = 32       # embedding_size
    FFN_HIDDEN = 64  # hidden_size (ffn)
    N_LAYERS = 2
    NUM_HEADS = 4
    BATCH, SEQ = 2, 8

    key = jax.random.PRNGKey(0)
    k_params, k_tokens = jax.random.split(key)
    params = init_params(k_params, VOCAB, EMBED, FFN_HIDDEN, N_LAYERS)
    tokens = jax.random.randint(k_tokens, (BATCH, SEQ), 0, VOCAB, dtype=jnp.int32)

    fwd = jax.jit(lambda t, p: transformer_encoder(t, p, num_heads=NUM_HEADS))
    out = fwd(tokens, params)
    out = jax.block_until_ready(out)
    assert out.shape == (BATCH, SEQ, EMBED) and out.dtype == jnp.float32
    assert bool(jnp.all(jnp.isfinite(out)))
    print("KERNEL_OK")
</pallas_src>

<mosaic_0001>
module attributes {stable_mosaic.version = 11 : i64} {
  func.func @encoder_stack_kernel(%arg0: i32, %arg1: i32, %arg2: memref<2x8x32xf32, #tpu.memory_space<vmem>>, %arg3: memref<1x32x96xf32, #tpu.memory_space<vmem>>, %arg4: memref<1x32x32xf32, #tpu.memory_space<vmem>>, %arg5: memref<1x1x32xf32, #tpu.memory_space<vmem>>, %arg6: memref<1x1x32xf32, #tpu.memory_space<vmem>>, %arg7: memref<1x32x64xf32, #tpu.memory_space<vmem>>, %arg8: memref<1x1x64xf32, #tpu.memory_space<vmem>>, %arg9: memref<1x64x32xf32, #tpu.memory_space<vmem>>, %arg10: memref<1x1x32xf32, #tpu.memory_space<vmem>>, %arg11: memref<1x1x32xf32, #tpu.memory_space<vmem>>, %arg12: memref<1x1x32xf32, #tpu.memory_space<vmem>>, %arg13: memref<2x8x32xf32, #tpu.memory_space<vmem>>) attributes {dimension_semantics = [#tpu.dimension_semantics<parallel>, #tpu.dimension_semantics<arbitrary>], iteration_bounds = array<i64: 1, 2>, scalar_prefetch = 0 : i64, scratch_operands = 0 : i64, tpu.core_type = #tpu.core_type<tc>, window_params = [{transform_indices = @transform_0, window_bounds = array<i64: 2, 8, 32>}, {transform_indices = @transform_1, window_bounds = array<i64: 1, 32, 96>}, {transform_indices = @transform_2, window_bounds = array<i64: 1, 32, 32>}, {transform_indices = @transform_3, window_bounds = array<i64: 1, 1, 32>}, {transform_indices = @transform_4, window_bounds = array<i64: 1, 1, 32>}, {transform_indices = @transform_5, window_bounds = array<i64: 1, 32, 64>}, {transform_indices = @transform_6, window_bounds = array<i64: 1, 1, 64>}, {transform_indices = @transform_7, window_bounds = array<i64: 1, 64, 32>}, {transform_indices = @transform_8, window_bounds = array<i64: 1, 1, 32>}, {transform_indices = @transform_9, window_bounds = array<i64: 1, 1, 32>}, {transform_indices = @transform_10, window_bounds = array<i64: 1, 1, 32>}, {transform_indices = @transform_11, window_bounds = array<i64: 2, 8, 32>}]} {
    %c0_i32 = arith.constant 0 : i32
    %0 = arith.cmpi eq, %arg1, %c0_i32 : i32
    %1 = arith.extui %0 : i1 to i32
    %c0_i32_0 = arith.constant 0 : i32
    %2 = arith.cmpi ne, %1, %c0_i32_0 : i32
    scf.if %2 {
      %c0_64 = arith.constant 0 : index
      %c0_65 = arith.constant 0 : index
      %c0_66 = arith.constant 0 : index
      %131 = vector.load %arg2[%c0_64, %c0_65, %c0_66] : memref<2x8x32xf32, #tpu.memory_space<vmem>>, vector<2x8x32xf32>
      %c0_67 = arith.constant 0 : index
      %c0_68 = arith.constant 0 : index
      %c0_69 = arith.constant 0 : index
      %132 = vector.load %arg13[%c0_67, %c0_68, %c0_69] : memref<2x8x32xf32, #tpu.memory_space<vmem>>, vector<2x8x32xf32>
      tpu.vector_store %arg13[%c0_67, %c0_68, %c0_69], %131 {strides = array<i32>} : memref<2x8x32xf32, #tpu.memory_space<vmem>>, vector<2x8x32xf32>,
    } else {
    }
    %c0 = arith.constant 0 : index
    %c0_1 = arith.constant 0 : index
    %c0_2 = arith.constant 0 : index
    %3 = vector.load %arg13[%c0, %c0_1, %c0_2] : memref<2x8x32xf32, #tpu.memory_space<vmem>>, vector<2x8x32xf32>
    %4 = vector.shape_cast %3 : vector<2x8x32xf32> to vector<16x32xf32>
    %c0_3 = arith.constant 0 : index
    %c0_4 = arith.constant 0 : index
    %c0_5 = arith.constant 0 : index
    %5 = vector.load %arg3[%c0_3, %c0_4, %c0_5] : memref<1x32x96xf32, #tpu.memory_space<vmem>>, vector<1x32x96xf32>
    %6 = vector.shape_cast %5 : vector<1x32x96xf32> to vector<32x96xf32>
    %cst = arith.constant dense<0.000000e+00> : vector<16x96xf32>
    %7 = tpu.matmul %4, %6, %cst {dimension_numbers = #tpu.dot_dimension_numbers<[1], [0], [0], [1], [0, 0, 1, 1], [], []>} : vector<16x32xf32>, vector<32x96xf32>, vector<16x96xf32> -> vector<16x96xf32>
    %8 = vector.extract_strided_slice %7 {offsets = [0, 0], sizes = [16, 32], strides = [1, 1]} : vector<16x96xf32> to vector<16x32xf32>
    %cst_6 = arith.constant 0.353553385 : f32
    %9 = vector.broadcast %cst_6 : f32 to vector<16x32xf32>
    %10 = arith.mulf %8, %9 : vector<16x32xf32>
    %11 = vector.extract_strided_slice %7 {offsets = [0, 32], sizes = [16, 32], strides = [1, 1]} : vector<16x96xf32> to vector<16x32xf32>
    %12 = vector.extract_strided_slice %7 {offsets = [0, 64], sizes = [16, 32], strides = [1, 1]} : vector<16x96xf32> to vector<16x32xf32>
    %c0_7 = arith.constant 0 : index
    %c0_8 = arith.constant 0 : index
    %c0_9 = arith.constant 0 : index
    %13 = vector.load %arg4[%c0_7, %c0_8, %c0_9] : memref<1x32x32xf32, #tpu.memory_space<vmem>>, vector<1x32x32xf32>
    %14 = vector.shape_cast %13 : vector<1x32x32xf32> to vector<32x32xf32>
    %15 = vector.shape_cast %14 : vector<32x32xf32> to vector<4x8x32xf32>
    %16 = vector.extract_strided_slice %10 {offsets = [0, 0], sizes = [8, 32], strides = [1, 1]} : vector<16x32xf32> to vector<8x32xf32>
    %17 = vector.shape_cast %16 : vector<8x32xf32> to vector<8x4x8xf32>
    %18 = vector.extract_strided_slice %11 {offsets = [0, 0], sizes = [8, 32], strides = [1, 1]} : vector<16x32xf32> to vector<8x32xf32>
    %19 = vector.shape_cast %18 : vector<8x32xf32> to vector<8x4x8xf32>
    %20 = vector.extract_strided_slice %12 {offsets = [0, 0], sizes = [8, 32], strides = [1, 1]} : vector<16x32xf32> to vector<8x32xf32>
    %21 = vector.shape_cast %20 : vector<8x32xf32> to vector<8x4x8xf32>
    "tpu.trace_start"() <{level = 10 : i32, message = "qhd,khd->hqk"}> : () -> ()
    %cst_10 = arith.constant dense<0.000000e+00> : vector<4x8x8xf32>
    %22 = tpu.matmul %17, %19, %cst_10 {dimension_numbers = #tpu.dot_dimension_numbers<[2], [2], [0], [0], [0, 1, 0, 0, 1, 0], [1], [1]>} : vector<8x4x8xf32>, vector<8x4x8xf32>, vector<4x8x8xf32> -> vector<4x8x8xf32>
    "tpu.trace_stop"() : () -> ()
    %cst_11 = arith.constant dense<0xFF800000> : vector<4x8xf32>
    %23 = vector.multi_reduction <maximumf>, %22, %cst_11 [2] : vector<4x8x8xf32> to vector<4x8xf32>
    %24 = vector.shape_cast %23 : vector<4x8xf32> to vector<4x8x1xf32>
    %25 = vector.broadcast %24 : vector<4x8x1xf32> to vector<4x8x8xf32>
    %26 = arith.subf %22, %25 : vector<4x8x8xf32>
    %27 = math.exp %26 : vector<4x8x8xf32>
    %cst_12 = arith.constant dense<0.000000e+00> : vector<4x8xf32>
    %28 = vector.multi_reduction <add>, %27, %cst_12 [2] : vector<4x8x8xf32> to vector<4x8xf32>
    %29 = vector.shape_cast %28 : vector<4x8xf32> to vector<4x8x1xf32>
    %cst_13 = arith.constant 1.000000e+00 : f32
    %30 = vector.broadcast %cst_13 : f32 to vector<4x8x1xf32>
    %31 = arith.divf %30, %29 : vector<4x8x1xf32>
    "tpu.trace_start"() <{level = 10 : i32, message = "hqk,khd->hqd"}> : () -> ()
    %cst_14 = arith.constant dense<0.000000e+00> : vector<4x8x8xf32>
    %32 = tpu.matmul %27, %21, %cst_14 {dimension_numbers = #tpu.dot_dimension_numbers<[2], [0], [1], [2], [0, 0, 0, 1, 1, 2], [0], [1]>} : vector<4x8x8xf32>, vector<8x4x8xf32>, vector<4x8x8xf32> -> vector<4x8x8xf32>
    "tpu.trace_stop"() : () -> ()
    %33 = vector.broadcast %31 : vector<4x8x1xf32> to vector<4x8x8xf32>
    %34 = arith.mulf %32, %33 : vector<4x8x8xf32>
    "tpu.trace_start"() <{level = 10 : i32, message = "hqd,hde->hqe"}> : () -> ()
    %cst_15 = arith.constant dense<0.000000e+00> : vector<4x8x32xf32>
    %35 = tpu.matmul %34, %15, %cst_15 {dimension_numbers = #tpu.dot_dimension_numbers<[2], [1], [1], [2], [0, 0, 0, 1, 1, 2], [0], [0]>} : vector<4x8x8xf32>, vector<4x8x32xf32>, vector<4x8x32xf32> -> vector<4x8x32xf32>
    "tpu.trace_stop"() : () -> ()
    %cst_16 = arith.constant dense<0.000000e+00> : vector<8x32xf32>
    %36 = vector.multi_reduction <add>, %35, %cst_16 [0] : vector<4x8x32xf32> to vector<8x32xf32>
    %37 = vector.extract_strided_slice %10 {offsets = [8, 0], sizes = [8, 32], strides = [1, 1]} : vector<16x32xf32> to vector<8x32xf32>
    %38 = vector.shape_cast %37 : vector<8x32xf32> to vector<8x4x8xf32>
    %39 = vector.extract_strided_slice %11 {offsets = [8, 0], sizes = [8, 32], strides = [1, 1]} : vector<16x32xf32> to vector<8x32xf32>
    %40 = vector.shape_cast %39 : vector<8x32xf32> to vector<8x4x8xf32>
    %41 = vector.extract_strided_slice %12 {offsets = [8, 0], sizes = [8, 32], strides = [1, 1]} : vector<16x32xf32> to vector<8x32xf32>
    %42 = vector.shape_cast %41 : vector<8x32xf32> to vector<8x4x8xf32>
    "tpu.trace_start"() <{level = 10 : i32, message = "qhd,khd->hqk"}> : () -> ()
    %cst_17 = arith.constant dense<0.000000e+00> : vector<4x8x8xf32>
    %43 = tpu.matmul %38, %40, %cst_17 {dimension_numbers = #tpu.dot_dimension_numbers<[2], [2], [0], [0], [0, 1, 0, 0, 1, 0], [1], [1]>} : vector<8x4x8xf32>, vector<8x4x8xf32>, vector<4x8x8xf32> -> vector<4x8x8xf32>
    "tpu.trace_stop"() : () -> ()
    %cst_18 = arith.constant dense<0xFF800000> : vector<4x8xf32>
    %44 = vector.multi_reduction <maximumf>, %43, %cst_18 [2] : vector<4x8x8xf32> to vector<4x8xf32>
    %45 = vector.shape_cast %44 : vector<4x8xf32> to vector<4x8x1xf32>
    %46 = vector.broadcast %45 : vector<4x8x1xf32> to vector<4x8x8xf32>
    %47 = arith.subf %43, %46 : vector<4x8x8xf32>
    %48 = math.exp %47 : vector<4x8x8xf32>
    %cst_19 = arith.constant dense<0.000000e+00> : vector<4x8xf32>
    %49 = vector.multi_reduction <add>, %48, %cst_19 [2] : vector<4x8x8xf32> to vector<4x8xf32>
    %50 = vector.shape_cast %49 : vector<4x8xf32> to vector<4x8x1xf32>
    %cst_20 = arith.constant 1.000000e+00 : f32
    %51 = vector.broadcast %cst_20 : f32 to vector<4x8x1xf32>
    %52 = arith.divf %51, %50 : vector<4x8x1xf32>
    "tpu.trace_start"() <{level = 10 : i32, message = "hqk,khd->hqd"}> : () -> ()
    %cst_21 = arith.constant dense<0.000000e+00> : vector<4x8x8xf32>
    %53 = tpu.matmul %48, %42, %cst_21 {dimension_numbers = #tpu.dot_dimension_numbers<[2], [0], [1], [2], [0, 0, 0, 1, 1, 2], [0], [1]>} : vector<4x8x8xf32>, vector<8x4x8xf32>, vector<4x8x8xf32> -> vector<4x8x8xf32>
    "tpu.trace_stop"() : () -> ()
    %54 = vector.broadcast %52 : vector<4x8x1xf32> to vector<4x8x8xf32>
    %55 = arith.mulf %53, %54 : vector<4x8x8xf32>
    "tpu.trace_start"() <{level = 10 : i32, message = "hqd,hde->hqe"}> : () -> ()
    %cst_22 = arith.constant dense<0.000000e+00> : vector<4x8x32xf32>
    %56 = tpu.matmul %55, %15, %cst_22 {dimension_numbers = #tpu.dot_dimension_numbers<[2], [1], [1], [2], [0, 0, 0, 1, 1, 2], [0], [0]>} : vector<4x8x8xf32>, vector<4x8x32xf32>, vector<4x8x32xf32> -> vector<4x8x32xf32>
    "tpu.trace_stop"() : () -> ()
    %cst_23 = arith.constant dense<0.000000e+00> : vector<8x32xf32>
    %57 = vector.multi_reduction <add>, %56, %cst_23 [0] : vector<4x8x32xf32> to vector<8x32xf32>
    %58 = tpu.concatenate %36, %57 in 0 : vector<8x32xf32>, vector<8x32xf32> -> vector<16x32xf32>
    %59 = arith.addf %58, %4 : vector<16x32xf32>
    %c0_24 = arith.constant 0 : index
    %c0_25 = arith.constant 0 : index
    %c0_26 = arith.constant 0 : index
    %60 = vector.load %arg5[%c0_24, %c0_25, %c0_26] : memref<1x1x32xf32, #tpu.memory_space<vmem>>, vector<1x1x32xf32>
    %61 = vector.shape_cast %60 : vector<1x1x32xf32> to vector<1x32xf32>
    %c0_27 = arith.constant 0 : index
    %c0_28 = arith.constant 0 : index
    %c0_29 = arith.constant 0 : index
    %62 = vector.load %arg6[%c0_27, %c0_28, %c0_29] : memref<1x1x32xf32, #tpu.memory_space<vmem>>, vector<1x1x32xf32>
    %63 = vector.shape_cast %62 : vector<1x1x32xf32> to vector<1x32xf32>
    %cst_30 = arith.constant dense<0.000000e+00> : vector<16xf32>
    %64 = vector.multi_reduction <add>, %59, %cst_30 [1] : vector<16x32xf32> to vector<16xf32>
    %65 = vector.shape_cast %64 : vector<16xf32> to vector<16x1xf32>
    %cst_31 = arith.constant 3.200000e+01 : f32
    %66 = vector.broadcast %cst_31 : f32 to vector<16x1xf32>
    %67 = arith.divf %65, %66 : vector<16x1xf32>
    %68 = vector.broadcast %67 : vector<16x1xf32> to vector<16x32xf32>
    %69 = arith.subf %59, %68 : vector<16x32xf32>
    %70 = arith.mulf %69, %69 : vector<16x32xf32>
    %cst_32 = arith.constant dense<0.000000e+00> : vector<16xf32>
    %71 = vector.multi_reduction <add>, %70, %cst_32 [1] : vector<16x32xf32> to vector<16xf32>
    %72 = vector.shape_cast %71 : vector<16xf32> to vector<16x1xf32>
    %cst_33 = arith.constant 3.200000e+01 : f32
    %73 = vector.broadcast %cst_33 : f32 to vector<16x1xf32>
    %74 = arith.divf %72, %73 : vector<16x1xf32>
    %75 = vector.broadcast %67 : vector<16x1xf32> to vector<16x32xf32>
    %76 = arith.subf %59, %75 : vector<16x32xf32>
    %cst_34 = arith.constant 9.99999974E-6 : f32
    %77 = vector.broadcast %cst_34 : f32 to vector<16x1xf32>
    %78 = arith.addf %74, %77 : vector<16x1xf32>
    %79 = math.rsqrt %78 : vector<16x1xf32>
    %80 = vector.broadcast %79 : vector<16x1xf32> to vector<16x32xf32>
    %81 = arith.mulf %76, %80 : vector<16x32xf32>
    %82 = vector.broadcast %61 : vector<1x32xf32> to vector<16x32xf32>
    %83 = arith.mulf %81, %82 : vector<16x32xf32>
    %84 = vector.broadcast %63 : vector<1x32xf32> to vector<16x32xf32>
    %85 = arith.addf %83, %84 : vector<16x32xf32>
    %c0_35 = arith.constant 0 : index
    %c0_36 = arith.constant 0 : index
    %c0_37 = arith.constant 0 : index
    %86 = vector.load %arg7[%c0_35, %c0_36, %c0_37] : memref<1x32x64xf32, #tpu.memory_space<vmem>>, vector<1x32x64xf32>
    %87 = vector.shape_cast %86 : vector<1x32x64xf32> to vector<32x64xf32>
    %cst_38 = arith.constant dense<0.000000e+00> : vector<16x64xf32>
    %88 = tpu.matmul %85, %87, %cst_38 {dimension_numbers = #tpu.dot_dimension_numbers<[1], [0], [0], [1], [0, 0, 1, 1], [], []>} : vector<16x32xf32>, vector<32x64xf32>, vector<16x64xf32> -> vector<16x64xf32>
    %c0_39 = arith.constant 0 : index
    %c0_40 = arith.constant 0 : index
    %c0_41 = arith.constant 0 : index
    %89 = vector.load %arg8[%c0_39, %c0_40, %c0_41] : memref<1x1x64xf32, #tpu.memory_space<vmem>>, vector<1x1x64xf32>
    %90 = vector.shape_cast %89 : vector<1x1x64xf32> to vector<1x64xf32>
    %91 = vector.broadcast %90 : vector<1x64xf32> to vector<16x64xf32>
    %92 = arith.addf %88, %91 : vector<16x64xf32>
    %cst_42 = arith.constant 0.000000e+00 : f32
    %93 = vector.broadcast %cst_42 : f32 to vector<16x64xf32>
    %94 = arith.maximumf %92, %93 : vector<16x64xf32>
    %c0_43 = arith.constant 0 : index
    %c0_44 = arith.constant 0 : index
    %c0_45 = arith.constant 0 : index
    %95 = vector.load %arg9[%c0_43, %c0_44, %c0_45] : memref<1x64x32xf32, #tpu.memory_space<vmem>>, vector<1x64x32xf32>
    %96 = vector.shape_cast %95 : vector<1x64x32xf32> to vector<64x32xf32>
    %cst_46 = arith.constant dense<0.000000e+00> : vector<16x32xf32>
    %97 = tpu.matmul %94, %96, %cst_46 {dimension_numbers = #tpu.dot_dimension_numbers<[1], [0], [0], [1], [0, 0, 1, 1], [], []>} : vector<16x64xf32>, vector<64x32xf32>, vector<16x32xf32> -> vector<16x32xf32>
    %c0_47 = arith.constant 0 : index
    %c0_48 = arith.constant 0 : index
    %c0_49 = arith.constant 0 : index
    %98 = vector.load %arg10[%c0_47, %c0_48, %c0_49] : memref<1x1x32xf32, #tpu.memory_space<vmem>>, vector<1x1x32xf32>
    %99 = vector.shape_cast %98 : vector<1x1x32xf32> to vector<1x32xf32>
    %100 = vector.broadcast %99 : vector<1x32xf32> to vector<16x32xf32>
    %101 = arith.addf %97, %100 : vector<16x32xf32>
    %102 = arith.addf %101, %85 : vector<16x32xf32>
    %c0_50 = arith.constant 0 : index
    %c0_51 = arith.constant 0 : index
    %c0_52 = arith.constant 0 : index
    %103 = vector.load %arg11[%c0_50, %c0_51, %c0_52] : memref<1x1x32xf32, #tpu.memory_space<vmem>>, vector<1x1x32xf32>
    %104 = vector.shape_cast %103 : vector<1x1x32xf32> to vector<1x32xf32>
    %c0_53 = arith.constant 0 : index
    %c0_54 = arith.constant 0 : index
    %c0_55 = arith.constant 0 : index
    %105 = vector.load %arg12[%c0_53, %c0_54, %c0_55] : memref<1x1x32xf32, #tpu.memory_space<vmem>>, vector<1x1x32xf32>
    %106 = vector.shape_cast %105 : vector<1x1x32xf32> to vector<1x32xf32>
    %cst_56 = arith.constant dense<0.000000e+00> : vector<16xf32>
    %107 = vector.multi_reduction <add>, %102, %cst_56 [1] : vector<16x32xf32> to vector<16xf32>
    %108 = vector.shape_cast %107 : vector<16xf32> to vector<16x1xf32>
    %cst_57 = arith.constant 3.200000e+01 : f32
    %109 = vector.broadcast %cst_57 : f32 to vector<16x1xf32>
    %110 = arith.divf %108, %109 : vector<16x1xf32>
    %111 = vector.broadcast %110 : vector<16x1xf32> to vector<16x32xf32>
    %112 = arith.subf %102, %111 : vector<16x32xf32>
    %113 = arith.mulf %112, %112 : vector<16x32xf32>
    %cst_58 = arith.constant dense<0.000000e+00> : vector<16xf32>
    %114 = vector.multi_reduction <add>, %113, %cst_58 [1] : vector<16x32xf32> to vector<16xf32>
    %115 = vector.shape_cast %114 : vector<16xf32> to vector<16x1xf32>
    %cst_59 = arith.constant 3.200000e+01 : f32
    %116 = vector.broadcast %cst_59 : f32 to vector<16x1xf32>
    %117 = arith.divf %115, %116 : vector<16x1xf32>
    %118 = vector.broadcast %110 : vector<16x1xf32> to vector<16x32xf32>
    %119 = arith.subf %102, %118 : vector<16x32xf32>
    %cst_60 = arith.constant 9.99999974E-6 : f32
    %120 = vector.broadcast %cst_60 : f32 to vector<16x1xf32>
    %121 = arith.addf %117, %120 : vector<16x1xf32>
    %122 = math.rsqrt %121 : vector<16x1xf32>
    %123 = vector.broadcast %122 : vector<16x1xf32> to vector<16x32xf32>
    %124 = arith.mulf %119, %123 : vector<16x32xf32>
    %125 = vector.broadcast %104 : vector<1x32xf32> to vector<16x32xf32>
    %126 = arith.mulf %124, %125 : vector<16x32xf32>
    %127 = vector.broadcast %106 : vector<1x32xf32> to vector<16x32xf32>
    %128 = arith.addf %126, %127 : vector<16x32xf32>
    %129 = vector.shape_cast %128 : vector<16x32xf32> to vector<2x8x32xf32>
    %c0_61 = arith.constant 0 : index
    %c0_62 = arith.constant 0 : index
    %c0_63 = arith.constant 0 : index
    %130 = vector.load %arg13[%c0_61, %c0_62, %c0_63] : memref<2x8x32xf32, #tpu.memory_space<vmem>>, vector<2x8x32xf32>
    tpu.vector_store %arg13[%c0_61, %c0_62, %c0_63], %129 {strides = array<i32>} : memref<2x8x32xf32, #tpu.memory_space<vmem>>, vector<2x8x32xf32>,
    return
  }
  func.func @transform_0(%arg0: i32, %arg1: i32) -> (i32, i32, i32) {
    %c0_i32 = arith.constant 0 : i32
    %c0_i32_0 = arith.constant 0 : i32
    %c0_i32_1 = arith.constant 0 : i32
    return %arg0, %c0_i32, %c0_i32_0 : i32, i32, i32
  }
  func.func @transform_1(%arg0: i32, %arg1: i32) -> (i32, i32, i32) {
    %c0_i32 = arith.constant 0 : i32
    %c0_i32_0 = arith.constant 0 : i32
    %c0_i32_1 = arith.constant 0 : i32
    return %arg1, %c0_i32, %c0_i32_0 : i32, i32, i32
  }
  func.func @transform_2(%arg0: i32, %arg1: i32) -> (i32, i32, i32) {
    %c0_i32 = arith.constant 0 : i32
    %c0_i32_0 = arith.constant 0 : i32
    %c0_i32_1 = arith.constant 0 : i32
    return %arg1, %c0_i32, %c0_i32_0 : i32, i32, i32
  }
  func.func @transform_3(%arg0: i32, %arg1: i32) -> (i32, i32, i32) {
    %c0_i32 = arith.constant 0 : i32
    %c0_i32_0 = arith.constant 0 : i32
    %c0_i32_1 = arith.constant 0 : i32
    return %arg1, %c0_i32, %c0_i32_0 : i32, i32, i32
  }
  func.func @transform_4(%arg0: i32, %arg1: i32) -> (i32, i32, i32) {
    %c0_i32 = arith.constant 0 : i32
    %c0_i32_0 = arith.constant 0 : i32
    %c0_i32_1 = arith.constant 0 : i32
    return %arg1, %c0_i32, %c0_i32_0 : i32, i32, i32
  }
  func.func @transform_5(%arg0: i32, %arg1: i32) -> (i32, i32, i32) {
    %c0_i32 = arith.constant 0 : i32
    %c0_i32_0 = arith.constant 0 : i32
    %c0_i32_1 = arith.constant 0 : i32
    return %arg1, %c0_i32, %c0_i32_0 : i32, i32, i32
  }
  func.func @transform_6(%arg0: i32, %arg1: i32) -> (i32, i32, i32) {
    %c0_i32 = arith.constant 0 : i32
    %c0_i32_0 = arith.constant 0 : i32
    %c0_i32_1 = arith.constant 0 : i32
    return %arg1, %c0_i32, %c0_i32_0 : i32, i32, i32
  }
  func.func @transform_7(%arg0: i32, %arg1: i32) -> (i32, i32, i32) {
    %c0_i32 = arith.constant 0 : i32
    %c0_i32_0 = arith.constant 0 : i32
    %c0_i32_1 = arith.constant 0 : i32
    return %arg1, %c0_i32, %c0_i32_0 : i32, i32, i32
  }
  func.func @transform_8(%arg0: i32, %arg1: i32) -> (i32, i32, i32) {
    %c0_i32 = arith.constant 0 : i32
    %c0_i32_0 = arith.constant 0 : i32
    %c0_i32_1 = arith.constant 0 : i32
    return %arg1, %c0_i32, %c0_i32_0 : i32, i32, i32
  }
  func.func @transform_9(%arg0: i32, %arg1: i32) -> (i32, i32, i32) {
    %c0_i32 = arith.constant 0 : i32
    %c0_i32_0 = arith.constant 0 : i32
    %c0_i32_1 = arith.constant 0 : i32
    return %arg1, %c0_i32, %c0_i32_0 : i32, i32, i32
  }
  func.func @transform_10(%arg0: i32, %arg1: i32) -> (i32, i32, i32) {
    %c0_i32 = arith.constant 0 : i32
    %c0_i32_0 = arith.constant 0 : i32
    %c0_i32_1 = arith.constant 0 : i32
    return %arg1, %c0_i32, %c0_i32_0 : i32, i32, i32
  }
  func.func @transform_11(%arg0: i32, %arg1: i32) -> (i32, i32, i32) {
    %c0_i32 = arith.constant 0 : i32
    %c0_i32_0 = arith.constant 0 : i32
    %c0_i32_1 = arith.constant 0 : i32
    return %arg0, %c0_i32, %c0_i32_0 : i32, i32, i32
  }
}

</mosaic_0001>

<bundles_post_ra>
// kernel: _lambda_.1
= control target key start
LH: loop header
LB: loop body
LE: loop exit
PB: predicated region body
PF: predicated region fallthrough
CT: control target
= control target key end

     0   :  { %s5370_s0 = inlined_call_operand.hbm [shape: f32[2,8,32], index: 0, kind: input, shape index: {}]   ;;  %s5371_s1 = inlined_call_operand.hbm [shape: f32[2,32,96], index: 1, kind: input, shape index: {}]   ;;  %s5372_s2 = inlined_call_operand.hbm [shape: f32[2,32,32], index: 2, kind: input, shape index: {}]   ;;  %s5373_s3 = inlined_call_operand.hbm [shape: f32[2,1,32], index: 3, kind: input, shape index: {}]   ;;  %s5374_s4 = inlined_call_operand.hbm [shape: f32[2,1,32], index: 4, kind: input, shape index: {}]   ;;  %s5375_s5 = inlined_call_operand.hbm [shape: f32[2,32,64], index: 5, kind: input, shape index: {}]   ;;  %s5376_s6 = inlined_call_operand.hbm [shape: f32[2,1,64], index: 6, kind: input, shape index: {}]   ;;  %s5377_s7 = inlined_call_operand.hbm [shape: f32[2,64,32], index: 7, kind: input, shape index: {}]   ;;  %s5378_s8 = inlined_call_operand.hbm [shape: f32[2,1,32], index: 8, kind: input, shape index: {}]   ;;  %s5379_s9 = inlined_call_operand.hbm [shape: f32[2,1,32], index: 9, kind: input, shape index: {}]   ;;  %s5380_s10 = inlined_call_operand.hbm [shape: f32[2,1,32], index: 10, kind: input, shape index: {}]   ;;  %s5381_s11 = inlined_call_operand.hbm [shape: f32[2,8,32], index: 11, kind: output, shape index: {}]  }
   0x1   :  { %5404 = sst [smem:[#allocation32_spill]] %s5370_s0 }
   0x2   :  { %5405 = sst [smem:[#allocation33_spill]] %s5371_s1 }
   0x3   :  { %5406 = sst [smem:[#allocation34_spill]] %s5372_s2 }
   0x4   :  { %5407 = sst [smem:[#allocation35_spill]] %s5373_s3 }
   0x5   :  { %5408 = sst [smem:[#allocation36_spill]] %s5375_s5 }
   0x6   :  { %5409 = sst [smem:[#allocation37_spill]] %s5376_s6 }
   0x7   :  { %5410 = sst [smem:[#allocation38_spill]] %s5377_s7 }
   0x8   :  { %5411 = sst [smem:[#allocation39_spill]] %s5378_s8 }
   0x9   :  { %5412 = sst [smem:[#allocation40_spill]] %s5380_s10 }
   0xa   :  { %5413 = sst [smem:[#allocation41_spill]] %s5381_s11 }
   0xb   :  { %16 = vsyncpa [#allocation3], 0 }
   0xc   :  { %17 = vsyncpa [#allocation6], 0 }
   0xd   :  { %19 = vsyncpa [#allocation6 + $0x1], 0 }
   0xe   :  { %20 = vsyncpa [#allocation9], 0 }
   0xf   :  { %22 = vsyncpa [#allocation9 + $0x1], 0 }
  0x10   :  { %23 = vsyncpa [#allocation12], 0 }
  0x11   :  { %25 = vsyncpa [#allocation12 + $0x1], 0 }
  0x12   :  { %26 = vsyncpa [#allocation15], 0 }
  0x13   :  { %28 = vsyncpa [#allocation15 + $0x1], 0 }
  0x14   :  { %29 = vsyncpa [#allocation18], 0 }
  0x15   :  { %31 = vsyncpa [#allocation18 + $0x1], 0 }
  0x16   :  { %32 = vsyncpa [#allocation4], 0  ;;  %s4599_s17 = smov 0   ;;  %s4601_s18 = smov 0  }
  0x17   :  { %s4603_s19 = smov 0   ;;  %s4605_s20 = smov 0  }
  0x18   :  { %s4607_s21 = smov 0   ;;  %s4609_s22 = smov 0  }
  0x19 LB: > { %5414 = sst [smem:[#allocation28_spill]] %s4502_s19  ;;  %s47_s23 = sadd.s32 1, %s4510_s21  ;;  %s4514_s22 = sphi %s4609_s22, %s38_s22   ;;  %s4510_s21 = sphi %s4607_s21, %s5460_s21   ;;  %s4506_s20 = sphi %s4605_s20, %s5459_s20   ;;  %s4502_s19 = sphi %s4603_s19, %s5455_s19   ;;  %s4498_s18 = sphi %s4601_s18, %s5458_s18   ;;  %s4494_s17 = sphi %s4599_s17, %s5457_s17  }
  0x1a   : > { %5415 = sst [smem:[#allocation29_spill]] %s4506_s20  ;;  %s83_s24 = sadd.s32 1, %s4502_s19 }
  0x1b   : > { %p48_p0 = scmp.ge.s32.totalorder %s47_s23, 2  ;;  %p90_p1 = scmp.ne.s32.totalorder %s4502_s19, %s4498_s18 }
  0x1c   : > { %p91_p2 = scmp.eq.s32.totalorder %s4514_s22, 0  ;;  %p3981_p5 = scmp.lt.s32.totalorder %s4514_s22, 2 }
  0x1d   : > { %s5462_s23 = smov (%p48_p0, %s47_s23), 0  ;;  %s4644_s27 = sand.u32 1, %s4514_s22  }
  0x1e   : > { %5416 = sst [smem:[#allocation30_spill]] %s5462_s23  ;;  %p4636_p3 = por %p91_p2, %p90_p1 }
  0x1f   : > { %s80_s26 = ssub.s32 %s4510_s21, %s5462_s23  ;;  %s4647_s28 = sand.u32 1, %s4502_s19  }
  0x20   : > { %p81_p4 = scmp.eq.s32.totalorder %s80_s26, 0  ;;  %s4653_s30 = sshll.u32 %s4647_s28, 5 }
  0x21   : > { %s4656_s12 = sshll.u32 %s4510_s21, 9  ;;  %s5419_s1 = sld [smem:[#allocation33_spill]] }
  0x22   : > { %s4650_s29 = scalar_select %p81_p4, %s4502_s19, %s83_s24  }
  0x23   : > { %s400_s16 = scalar_lea.vmem [#allocation5], %s4653_s30  ;;  %p4669_p6 = pnand %p3981_p5, %p4636_p3 }
  0x24   : > { %5418 = sst [smem:[#allocation31_spill]] %s4650_s29  ;;  %s407_s26 = sshll.u32 %s400_s16, 4  ;;  %s4665_s26 = int_to_ptr.vmem [resolvable:$true] %s407_s26 }
  0x25   : > { %s5420_s24 = scalar_select %p4669_p6, 1, 0 }
  0x26   : > { %s4674_s23 = sshll.u32 %s4510_s21, 4  ;;  %p4681_p8 = pneg %p4669_p6 }
  0x27   : > { %s4662_s15 = scalar_lea.hbm %s5419_s1, %s4656_s12  ;;  %s4091_s19 = scalar_lea.hbm %s5419_s1, 1024 }
  0x28   : > { %s4086_s13 = scalar_lea.hbm %s4662_s15, 512  ;;  %p4092_p11 = scmp.lt.u32.totalorder %s4662_s15, %s5419_s1 }
  0x29   : > { %p4087_p7 = scmp.ne.s32.totalorder %s4662_s15, %s4086_s13  ;;  %p4093_p12 = scmp.lt.u32.totalorder %s4091_s19, %s4086_s13 }
  0x2a   : > { %s5421_s14 = scalar_select %p4681_p8, 1, 0 }
  0x2b   : > { %p4089_p9 = pnand %p4681_p8, %p4087_p7  ;;  %p4094_p13 = por %p4093_p12, %p4092_p11 }
  0x2c   : > { %p4095_p0 = scmp.lt.u32.totalorder %s4086_s13, %s4662_s15 }
  0x2d   : > { %p4090_p10 = pneg %p4089_p9 }
  0x2e   : > { %p4096_p1 = por %p4095_p0, %p4094_p13 }
  0x30   : > { %p4097_p2 = pnand %p4096_p1, %p4090_p10 }
  0x32   : > { %4100 = shalt.err (!%p4097_p2)
}
  0x33   : > { %s4101_s29 = scalar_lea.vmem %s4665_s26, 512  ;;  %s4516_s25 = smov [#allocation5]  }
  0x34   : > { %p4102_p3 = scmp.ne.s32.totalorder %s4665_s26, %s4101_s29  ;;  %s4106_s16 = sshll.u32 %s4516_s25, 4  ;;  %s4107_s16 = int_to_ptr.vmem [resolvable:$false] %s4106_s16 }
  0x35   : > { %s4108_s11 = scalar_lea.vmem %s4107_s16, 1024  ;;  %p4109_p7 = scmp.lt.s32.totalorder %s4665_s26, %s4107_s16 }
  0x36   : > { %p4104_p4 = pnand %p4102_p3, %p4681_p8  ;;  %p4110_p9 = scmp.lt.s32.totalorder %s4108_s11, %s4101_s29 }
  0x38   : > { %p4105_p5 = pneg %p4104_p4  ;;  %p4111_p11 = por %p4110_p9, %p4109_p7 }
  0x3a   : > { %p4112_p12 = pnand %p4111_p11, %p4105_p5 }
  0x3c   : > { %4115 = shalt.err (!%p4112_p12)
}
  0x3d   : > { %s5388_s19 = smov 128   ;;  %s4518_s20 = smov 8  }
  0x3e   : > { %s5422_s13 = scalar_lea.sflag [#allocation6], %s4644_s27  ;;  %s5423_s3 = sld [smem:[#allocation35_spill]] }
  0x3f   : > { %3952 = dma.hbm_to_vmem [thread:$0]  (!%p4669_p6), %s4662_s15, 512, %s4665_s26, %s5422_s13, %s5388_s19, %s5388_s19, %s4518_s20  }
  0x40   : > { %s441_s11 = scalar_lea.vmem [#allocation8], %s4647_s28  ;;  %s5392_s10 = scalar_lea.sflag [#allocation9], %s4644_s27 }
  0x41   : > { %s448_s1 = sshll.u32 %s441_s11, 4  ;;  %s449_s1 = int_to_ptr.vmem [resolvable:$true] %s448_s1 }
  0x44   : > { %s4713_s16 = scalar_lea.hbm %s5423_s3, %s4674_s23  ;;  %s4121_s26 = scalar_lea.hbm %s5423_s3, 32 }
  0x45   : > { %s4116_s8 = scalar_lea.hbm %s4713_s16, 16  ;;  %p4122_p1 = scmp.lt.u32.totalorder %s4713_s16, %s5423_s3 }
  0x46   : > { %p4117_p10 = scmp.ne.s32.totalorder %s4713_s16, %s4116_s8  ;;  %p4123_p2 = scmp.lt.u32.totalorder %s4121_s26, %s4116_s8 }
  0x47   : > { %p4125_p4 = scmp.lt.u32.totalorder %s4116_s8, %s4713_s16 }
  0x48   : > { %p4119_p13 = pnand %p4117_p10, %p4681_p8  ;;  %p4124_p3 = por %p4123_p2, %p4122_p1 }
  0x4a   : > { %p4120_p0 = pneg %p4119_p13  ;;  %p4126_p5 = por %p4125_p4, %p4124_p3 }
  0x4c   : > { %p4127_p7 = pnand %p4126_p5, %p4120_p0 }
  0x4e   : > { %4130 = shalt.err (!%p4127_p7)
}
  0x4f   : > { %s4131_s25 = scalar_lea.vmem %s449_s1, 16  ;;  %s4519_s11 = smov [#allocation8]  }
  0x50   : > { %p4132_p9 = scmp.ne.s32.totalorder %s449_s1, %s4131_s25  ;;  %s4136_s19 = sshll.u32 %s4519_s11, 4  ;;  %s4137_s19 = int_to_ptr.vmem [resolvable:$false] %s4136_s19 }
  0x51   : > { %s4138_s6 = scalar_lea.vmem %s4137_s19, 32  ;;  %p4139_p10 = scmp.lt.s32.totalorder %s449_s1, %s4137_s19 }
  0x52   : > { %p4134_p11 = pnand %p4132_p9, %p4681_p8  ;;  %p4140_p13 = scmp.lt.s32.totalorder %s4138_s6, %s4131_s25 }
  0x54   : > { %p4135_p12 = pneg %p4134_p11  ;;  %p4141_p6 = por %p4140_p13, %p4139_p10 }
  0x56   : > { %p4142_p1 = pnand %p4141_p6, %p4135_p12 }
  0x58   : > { %4145 = shalt.err (!%p4142_p1)
}
  0x59   : > { %p5424_p2 = scmp.ne.s32.totalorder %s5420_s24, 0  ;;  %s5425_s5 = sld [smem:[#allocation36_spill]] }
  0x5a   : > { %s476_s19 = scalar_lea.vmem [#allocation11], %s4653_s30  ;;  %s3597_s29 = sshll.u32 %s4647_s28, 6 }
  0x5b   : > { %3958 = dma.hbm_to_vmem [thread:$0]  (!%p5424_p2), %s4713_s16, 16, %s449_s1, %s5392_s10  }
  0x5c   : > { %s483_s13 = sshll.u32 %s476_s19, 4  ;;  %s5394_s25 = scalar_lea.sflag [#allocation12], %s4644_s27  ;;  %s4743_s13 = int_to_ptr.vmem [resolvable:$true] %s483_s13 }
  0x5f   : > { %s4740_s26 = scalar_lea.hbm %s5425_s5, %s4656_s12  ;;  %s4151_s6 = scalar_lea.hbm %s5425_s5, 1024 }
  0x60   : > { %s4146_s11 = scalar_lea.hbm %s4740_s26, 512  ;;  %p4152_p4 = scmp.lt.u32.totalorder %s4740_s26, %s5425_s5 }
  0x61   : > { %p4147_p6 = scmp.ne.s32.totalorder %s4740_s26, %s4146_s11  ;;  %p4153_p5 = scmp.lt.u32.totalorder %s4151_s6, %s4146_s11 }
  0x62   : > { %p4155_p9 = scmp.lt.u32.totalorder %s4146_s11, %s4740_s26 }
  0x63   : > { %p4149_p0 = pnand %p4147_p6, %p4681_p8  ;;  %p4154_p7 = por %p4153_p5, %p4152_p4 }
  0x65   : > { %p4150_p3 = pneg %p4149_p0  ;;  %p4156_p11 = por %p4155_p9, %p4154_p7 }
  0x67   : > { %p4157_p12 = pnand %p4156_p11, %p4150_p3 }
  0x69   : > { %4160 = shalt.err (!%p4157_p12)
}
  0x6a   : > { %s4161_s19 = scalar_lea.vmem %s4743_s13, 512  ;;  %s4520_s1 = smov [#allocation11]  }
  0x6b   : > { %p4162_p10 = scmp.ne.s32.totalorder %s4743_s13, %s4161_s19  ;;  %s4166_s16 = sshll.u32 %s4520_s1, 4  ;;  %s4167_s16 = int_to_ptr.vmem [resolvable:$false] %s4166_s16 }
  0x6c   : > { %s4168_s8 = scalar_lea.vmem %s4167_s16, 1024  ;;  %p4169_p6 = scmp.lt.s32.totalorder %s4743_s13, %s4167_s16 }
  0x6d   : > { %p4164_p13 = pnand %p4162_p10, %p4681_p8  ;;  %p4170_p0 = scmp.lt.s32.totalorder %s4168_s8, %s4161_s19 }
  0x6f   : > { %p4165_p1 = pneg %p4164_p13  ;;  %p4171_p4 = por %p4170_p0, %p4169_p6 }
  0x71   : > { %p4172_p5 = pnand %p4171_p4, %p4165_p1 }
  0x73   : > { %4175 = shalt.err (!%p4172_p5)
}
  0x74   : > { %s5426_s11 = smov 128   ;;  %s3653_s6 = sshll.u32 %s4510_s21, 10 }
  0x75   : > { %3964 = dma.hbm_to_vmem [thread:$0]  (!%p5424_p2), %s4740_s26, 512, %s4743_s13, %s5394_s25, %s5426_s11, %s5426_s11, %s4518_s20  }
  0x76   : > { %s5427_s7 = sld [smem:[#allocation38_spill]]  ;;  %s514_s16 = scalar_lea.vmem [#allocation14], %s3597_s29 }
  0x77   : > { %s521_s8 = sshll.u32 %s514_s16, 4  ;;  %s5393_s10 = scalar_lea.sflag [#allocation15], %s4644_s27  ;;  %s4781_s8 = int_to_ptr.vmem [resolvable:$true] %s521_s8 }
  0x7c   : > { %s4777_s1 = scalar_lea.hbm %s5427_s7, %s3653_s6  ;;  %s4181_s6 = scalar_lea.hbm %s5427_s7, 2048 }
  0x7d   : > { %s4176_s3 = scalar_lea.hbm %s4777_s1, 1024  ;;  %p4182_p11 = scmp.lt.u32.totalorder %s4777_s1, %s5427_s7 }
  0x7e   : > { %p4177_p3 = scmp.ne.s32.totalorder %s4777_s1, %s4176_s3  ;;  %p4183_p12 = scmp.lt.u32.totalorder %s4181_s6, %s4176_s3 }
  0x7f   : > { %p4185_p13 = scmp.lt.u32.totalorder %s4176_s3, %s4777_s1 }
  0x80   : > { %p4179_p7 = pnand %p4177_p3, %p4681_p8  ;;  %p4184_p10 = por %p4183_p12, %p4182_p11 }
  0x82   : > { %p4180_p9 = pneg %p4179_p7  ;;  %p4186_p1 = por %p4185_p13, %p4184_p10 }
  0x84   : > { %p4187_p6 = pnand %p4186_p1, %p4180_p9 }
  0x86   : > { %4190 = shalt.err (!%p4187_p6)
}
  0x87   : > { %s4191_s29 = scalar_lea.vmem %s4781_s8, 1024  ;;  %s4521_s16 = smov [#allocation14]  }
  0x88   : > { %p4192_p0 = scmp.ne.s32.totalorder %s4781_s8, %s4191_s29  ;;  %s4196_s26 = sshll.u32 %s4521_s16, 4  ;;  %s4197_s26 = int_to_ptr.vmem [resolvable:$false] %s4196_s26 }
  0x89   : > { %s4198_s13 = scalar_lea.vmem %s4197_s26, 2048  ;;  %p4199_p3 = scmp.lt.s32.totalorder %s4781_s8, %s4197_s26 }
  0x8a   : > { %p4194_p4 = pnand %p4192_p0, %p4681_p8  ;;  %p4200_p7 = scmp.lt.s32.totalorder %s4198_s13, %s4191_s29 }
  0x8c   : > { %p4195_p5 = pneg %p4194_p4  ;;  %p4201_p11 = por %p4200_p7, %p4199_p3 }
  0x8e   : > { %p4202_p12 = pnand %p4201_p11, %p4195_p5 }
  0x90   : > { %4205 = shalt.err (!%p4202_p12)
}
  0x91   : > { %3970 = dma.hbm_to_vmem [thread:$0]  (!%p5424_p2), %s4777_s1, 1024, %s4781_s8, %s5393_s10, %s5426_s11, %s5426_s11, %s4518_s20  }
  0x92   : > { %s4814_s15 = scalar_lea.hbm %s5379_s9, %s4674_s23  ;;  %s551_s19 = scalar_lea.vmem [#allocation17], %s4647_s28 }
  0x93   : > { %s558_s29 = sshll.u32 %s551_s19, 4  ;;  %s5396_s16 = scalar_lea.sflag [#allocation18], %s4644_s27  ;;  %s559_s29 = int_to_ptr.vmem [resolvable:$true] %s558_s29 }
  0x94   : > { %s4206_s26 = scalar_lea.hbm %s4814_s15, 16  ;;  %s4211_s8 = scalar_lea.hbm %s5379_s9, 32 }
  0x95   : > { %p4207_p9 = scmp.ne.s32.totalorder %s4814_s15, %s4206_s26  ;;  %p4212_p1 = scmp.lt.u32.totalorder %s4814_s15, %s5379_s9 }
  0x96   : > { %p4213_p6 = scmp.lt.u32.totalorder %s4211_s8, %s4206_s26  ;;  %p4215_p4 = scmp.lt.u32.totalorder %s4206_s26, %s4814_s15 }
  0x97   : > { %p4209_p10 = pnand %p4207_p9, %p4681_p8 }
  0x98   : > { %p4214_p0 = por %p4213_p6, %p4212_p1 }
  0x99   : > { %p4210_p13 = pneg %p4209_p10 }
  0x9a   : > { %p4216_p5 = por %p4215_p4, %p4214_p0 }
  0x9c   : > { %p4217_p3 = pnand %p4216_p5, %p4210_p13 }
  0x9e   : > { %4220 = shalt.err (!%p4217_p3)
}
  0x9f   : > { %s4221_s19 = scalar_lea.vmem %s559_s29, 16  ;;  %s4522_s10 = smov [#allocation17]  }
  0xa0   : > { %p4222_p7 = scmp.ne.s32.totalorder %s559_s29, %s4221_s19  ;;  %s4226_s25 = sshll.u32 %s4522_s10, 4  ;;  %s4227_s25 = int_to_ptr.vmem [resolvable:$false] %s4226_s25 }
  0xa1   : > { %s4228_s13 = scalar_lea.vmem %s4227_s25, 32  ;;  %p4229_p9 = scmp.lt.s32.totalorder %s559_s29, %s4227_s25 }
  0xa2   : > { %p4224_p11 = pnand %p4222_p7, %p4681_p8  ;;  %p4230_p10 = scmp.lt.s32.totalorder %s4228_s13, %s4221_s19 }
  0xa4   : > { %p4225_p12 = pneg %p4224_p11  ;;  %p4231_p2 = por %p4230_p10, %p4229_p9 }
  0xa6   : > { %p4232_p1 = pnand %p4231_p2, %p4225_p12 }
  0xa8   : > { %4235 = shalt.err (!%p4232_p1)
}
  0xa9   : > { %p5428_p6 = scmp.ne.s32.totalorder %s5420_s24, 0  ;;  %s4838_s10 = sadd.s32 4294967295, %s4514_s22  }
  0xaa   : > { %p96_p2 = scmp.ne.s32.totalorder %s4498_s18, %s4494_s17  ;;  %p5397_p13 = scmp.eq.s32.totalorder %s4838_s10, 0 }
  0xab   : > { %3976 = dma.hbm_to_vmem [thread:$0]  (!%p5428_p6), %s4814_s15, 16, %s559_s29, %s5396_s16  }
  0xac   : > { %p3582_p0 = scmp.ge.s32.totalorder %s4514_s22, 1  ;;  %p367_p4 = scmp.lt.s32.totalorder %s4514_s22, 3 }
  0xad   : > { %p4847_p5 = por %p5397_p13, %p96_p2  ;;  %s4523_s15 = smov [#allocation2]  }
  0xae   : > { %p4851_p3 = pnand %p3582_p0, %p367_p4  ;;  %s382_s29 = sshll.u32 %s4523_s15, 4  ;;  %s4855_s29 = int_to_ptr.vmem [resolvable:$true] %s382_s29 }
  0xaf   : > { %s5429_s25 = scalar_select %p4847_p5, 1, 0 }
  0xb0   : > { %s5430_s26 = scalar_select %p4851_p3, 1, 0 }
  0xb1   : > { %p3945_p7 = pneg %p4851_p3  ;;  %s5431_s2 = sld [smem:[#allocation34_spill]] }
  0xb2   : > { %s421_s3 = scalar_lea.vmem [#allocation7], %s4653_s30 }
  0xb3   : > { %s428_s6 = sshll.u32 %s421_s3, 4  ;;  %p4868_p11 = pnand %p3945_p7, %p5397_p13  ;;  %s4872_s6 = int_to_ptr.vmem [resolvable:$true] %s428_s6 }
  0xb5   : > { %s5432_s19 = scalar_select %p4868_p11, 1, 0 }
  0xb7   : > { %s4863_s8 = scalar_lea.hbm %s5431_s2, %s4656_s12  ;;  %s4241_s17 = scalar_lea.hbm %s5431_s2, 1024 }
  0xb8   : > { %s4236_s13 = scalar_lea.hbm %s4863_s8, 512  ;;  %p4242_p1 = scmp.lt.u32.totalorder %s4863_s8, %s5431_s2 }
  0xb9   : > { %p4237_p12 = scmp.ne.s32.totalorder %s4863_s8, %s4236_s13  ;;  %p4243_p2 = scmp.lt.u32.totalorder %s4241_s17, %s4236_s13 }
  0xba   : > { %p4245_p4 = scmp.lt.u32.totalorder %s4236_s13, %s4863_s8 }
  0xbb   : > { %p4239_p9 = pnand %p4237_p12, %p4681_p8  ;;  %p4244_p0 = por %p4243_p2, %p4242_p1 }
  0xbd   : > { %p4240_p10 = pneg %p4239_p9  ;;  %p4246_p7 = por %p4245_p4, %p4244_p0 }
  0xbf   : > { %p4247_p13 = pnand %p4246_p7, %p4240_p10 }
  0xc1   : > { %4250 = shalt.err (!%p4247_p13)
}
  0xc2   : > { %s4251_s30 = scalar_lea.vmem %s4872_s6, 512  ;;  %s4524_s3 = smov [#allocation7]  }
  0xc3   : > { %p4252_p12 = scmp.ne.s32.totalorder %s4872_s6, %s4251_s30  ;;  %s4256_s12 = sshll.u32 %s4524_s3, 4  ;;  %s4257_s12 = int_to_ptr.vmem [resolvable:$false] %s4256_s12 }
  0xc4   : > { %s4258_s16 = scalar_lea.vmem %s4257_s12, 1024  ;;  %p4259_p3 = scmp.lt.s32.totalorder %s4872_s6, %s4257_s12 }
  0xc5   : > { %p4254_p9 = pnand %p4252_p12, %p4681_p8  ;;  %p4260_p11 = scmp.lt.s32.totalorder %s4258_s16, %s4251_s30 }
  0xc7   : > { %p4255_p5 = pneg %p4254_p9  ;;  %p4261_p1 = por %p4260_p11, %p4259_p3 }
  0xc9   : > { %p4262_p2 = pnand %p4261_p1, %p4255_p5 }
  0xcb   : > { %4265 = shalt.err (!%p4262_p2)
}
  0xcc   : > { %s5433_s13 = scalar_lea.sflag [#allocation6], %s4644_s27  ;;  %s4904_s1 = scalar_lea.hbm %s5374_s4, %s4674_s23 }
  0xcd   : > { %3955 = dma.hbm_to_vmem [thread:$0]  (!%p5428_p6), %s4863_s8, 512, %s4872_s6, %s5433_s13, %s5426_s11, %s5426_s11, %s4518_s20  }
  0xce   : > { %s5434_s0 = sld [smem:[#allocation32_spill]]  ;;  %p5435_p5 = scmp.ne.s32.totalorder %s5432_s19, 0 }
  0xd0   : > { %p4268_p3 = pneg %p5435_p5 }
  0xd4   : > { %s4266_s12 = scalar_lea.hbm %s5434_s0, 256 }
  0xd5   : > { %p4267_p13 = scmp.ne.s32.totalorder %s5434_s0, %s4266_s12  ;;  %p4273_p0 = scmp.lt.u32.totalorder %s4266_s12, %s5434_s0 }
  0xd7   : > { %p4269_p11 = pnand %p4268_p3, %p4267_p13 }
  0xd9   : > { %p4270_p10 = pneg %p4269_p11 }
  0xdb   : > { %p4275_p4 = pnand %p4273_p0, %p4270_p10 }
  0xdd   : > { %4278 = shalt.err (!%p4275_p4)
}
  0xde   : > { %s4279_s8 = scalar_lea.vmem %s4855_s29, 256  ;;  %p4287_p1 = scmp.lt.s32.totalorder %s4855_s29, %s4855_s29 }
  0xdf   : > { %p4280_p7 = scmp.ne.s32.totalorder %s4855_s29, %s4279_s8  ;;  %p4288_p2 = scmp.lt.s32.totalorder %s4279_s8, %s4279_s8 }
  0xe1   : > { %p4282_p12 = pnand %p4280_p7, %p4268_p3  ;;  %p4289_p6 = por %p4288_p2, %p4287_p1 }
  0xe3   : > { %p4283_p9 = pneg %p4282_p12 }
  0xe5   : > { %p4290_p8 = pnand %p4289_p6, %p4283_p9 }
  0xe7   : > { %4293 = shalt.err (!%p4290_p8)
}
  0xe8   : > { %3948 = dma.hbm_to_vmem [thread:$0]  (!%p5435_p5), %s5434_s0, 256, %s4855_s29, [#allocation3], %s5426_s11, %s5426_s11, %s4518_s20  }
  0xe9   : > { %s458_s7 = scalar_lea.vmem [#allocation10], %s4647_s28  ;;  %s5436_s15 = sld [smem:[#allocation37_spill]] }
  0xea   : > { %s465_s6 = sshll.u32 %s458_s7, 4  ;;  %s4294_s30 = scalar_lea.hbm %s4904_s1, 16  ;;  %s466_s6 = int_to_ptr.vmem [resolvable:$true] %s465_s6 }
  0xeb   : > { %p4295_p8 = scmp.ne.s32.totalorder %s4904_s1, %s4294_s30  ;;  %p5437_p6 = scmp.ne.s32.totalorder %s5421_s14, 0 }
  0xec   : > { %s4299_s16 = scalar_lea.hbm %s5374_s4, 32  ;;  %p4300_p5 = scmp.lt.u32.totalorder %s4904_s1, %s5374_s4 }
  0xed   : > { %p4297_p13 = pnand %p4295_p8, %p5437_p6  ;;  %p4301_p11 = scmp.lt.u32.totalorder %s4299_s16, %s4294_s30 }
  0xee   : > { %p4303_p0 = scmp.lt.u32.totalorder %s4294_s30, %s4904_s1 }
  0xef   : > { %s4935_s17 = scalar_lea.hbm %s5436_s15, %s4674_s23  ;;  %p4298_p3 = pneg %p4297_p13 }
  0xf0   : > { %p4302_p10 = por %p4301_p11, %p4300_p5 }
  0xf2   : > { %p4304_p4 = por %p4303_p0, %p4302_p10 }
  0xf4   : > { %p4305_p7 = pnand %p4304_p4, %p4298_p3 }
  0xf6   : > { %4308 = shalt.err (!%p4305_p7)
}
  0xf7   : > { %s4309_s20 = scalar_lea.vmem %s466_s6, 16  ;;  %s4525_s11 = smov [#allocation10]  }
  0xf8   : > { %p4310_p12 = scmp.ne.s32.totalorder %s466_s6, %s4309_s20  ;;  %s4314_s29 = sshll.u32 %s4525_s11, 4  ;;  %s4315_s29 = int_to_ptr.vmem [resolvable:$false] %s4314_s29 }
  0xf9   : > { %s4316_s5 = scalar_lea.vmem %s4315_s29, 32  ;;  %p4317_p2 = scmp.lt.s32.totalorder %s466_s6, %s4315_s29 }
  0xfa   : > { %p4312_p9 = pnand %p4310_p12, %p5437_p6  ;;  %p4318_p8 = scmp.lt.s32.totalorder %s4316_s5, %s4309_s20 }
  0xfc   : > { %p4313_p1 = pneg %p4312_p9  ;;  %p4319_p13 = por %p4318_p8, %p4317_p2 }
  0xfe   : > { %p4320_p5 = pnand %p4319_p13, %p4313_p1 }
 0x100   : > { %4323 = shalt.err (!%p4320_p5)
}
 0x101   : > { %p5438_p11 = scmp.ne.s32.totalorder %s5420_s24, 0  ;;  %s5439_s7 = scalar_lea.sflag [#allocation9], %s4644_s27 }
 0x102   : > { %s496_s13 = scalar_lea.vmem [#allocation13], %s4647_s28  ;;  %s5440_s12 = sld [smem:[#allocation39_spill]] }
 0x103   : > { %3961 = dma.hbm_to_vmem [thread:$0]  (!%p5438_p11), %s4904_s1, 16, %s466_s6, %s5439_s7  }
 0x104   : > { %s503_s19 = sshll.u32 %s496_s13, 4  ;;  %s4324_s8 = scalar_lea.hbm %s4935_s17, 16  ;;  %s504_s19 = int_to_ptr.vmem [resolvable:$true] %s503_s19 }
 0x105   : > { %p4325_p3 = scmp.ne.s32.totalorder %s4935_s17, %s4324_s8  ;;  %s4329_s11 = scalar_lea.hbm %s5436_s15, 32 }
 0x106   : > { %p4330_p4 = scmp.lt.u32.totalorder %s4935_s17, %s5436_s15  ;;  %p4331_p7 = scmp.lt.u32.totalorder %s4329_s11, %s4324_s8 }
 0x107   : > { %p4327_p10 = pnand %p4325_p3, %p5437_p6  ;;  %p4333_p9 = scmp.lt.u32.totalorder %s4324_s8, %s4935_s17 }
 0x108   : > { %s4961_s16 = scalar_lea.hbm %s5440_s12, %s4674_s23  ;;  %p4332_p12 = por %p4331_p7, %p4330_p4 }
 0x109   : > { %p4328_p0 = pneg %p4327_p10 }
 0x10a   : > { %p4334_p1 = por %p4333_p9, %p4332_p12 }
 0x10c   : > { %p4335_p2 = pnand %p4334_p1, %p4328_p0 }
 0x10e   : > { %4338 = shalt.err (!%p4335_p2)
}
 0x10f   : > { %s4339_s1 = scalar_lea.vmem %s504_s19, 16  ;;  %s4526_s6 = smov [#allocation13]  }
 0x110   : > { %p4340_p8 = scmp.ne.s32.totalorder %s504_s19, %s4339_s1  ;;  %s4344_s7 = sshll.u32 %s4526_s6, 4  ;;  %s4345_s7 = int_to_ptr.vmem [resolvable:$false] %s4344_s7 }
 0x111   : > { %s4346_s13 = scalar_lea.vmem %s4345_s7, 32  ;;  %p4347_p3 = scmp.lt.s32.totalorder %s504_s19, %s4345_s7 }
 0x112   : > { %p4342_p13 = pnand %p4340_p8, %p5437_p6  ;;  %p4348_p10 = scmp.lt.s32.totalorder %s4346_s13, %s4339_s1 }
 0x114   : > { %p4343_p5 = pneg %p4342_p13  ;;  %p4349_p11 = por %p4348_p10, %p4347_p3 }
 0x116   : > { %p4350_p4 = pnand %p4349_p11, %p4343_p5 }
 0x118   : > { %4353 = shalt.err (!%p4350_p4)
}
 0x119   : > { %p5441_p7 = scmp.ne.s32.totalorder %s5420_s24, 0  ;;  %s5442_s30 = scalar_lea.sflag [#allocation12], %s4644_s27 }
 0x11a   : > { %s534_s3 = scalar_lea.vmem [#allocation16], %s4647_s28  ;;  %s5443_s11 = sld [smem:[#allocation40_spill]] }
 0x11b   : > { %3967 = dma.hbm_to_vmem [thread:$0]  (!%p5441_p7), %s4935_s17, 16, %s504_s19, %s5442_s30  }
 0x11c   : > { %s541_s8 = sshll.u32 %s534_s3, 4  ;;  %s4354_s5 = scalar_lea.hbm %s4961_s16, 16  ;;  %s542_s8 = int_to_ptr.vmem [resolvable:$true] %s541_s8 }
 0x11d   : > { %p4355_p11 = scmp.ne.s32.totalorder %s4961_s16, %s4354_s5  ;;  %s4359_s7 = scalar_lea.hbm %s5440_s12, 32 }
 0x11e   : > { %p4360_p9 = scmp.lt.u32.totalorder %s4961_s16, %s5440_s12  ;;  %p4361_p1 = scmp.lt.u32.totalorder %s4359_s7, %s4354_s5 }
 0x11f   : > { %p4357_p0 = pnand %p4355_p11, %p5437_p6  ;;  %p4363_p8 = scmp.lt.u32.totalorder %s4354_s5, %s4961_s16 }
 0x120   : > { %s4987_s29 = scalar_lea.hbm %s5443_s11, %s4674_s23  ;;  %p4362_p2 = por %p4361_p1, %p4360_p9 }
 0x121   : > { %p4358_p12 = pneg %p4357_p0 }
 0x122   : > { %p4364_p13 = por %p4363_p8, %p4362_p2 }
 0x124   : > { %p4365_p5 = pnand %p4364_p13, %p4358_p12 }
 0x126   : > { %4368 = shalt.err (!%p4365_p5)
}
 0x127   : > { %s4369_s23 = scalar_lea.vmem %s542_s8, 16  ;;  %s4527_s17 = smov [#allocation16]  }
 0x128   : > { %p4370_p3 = scmp.ne.s32.totalorder %s542_s8, %s4369_s23  ;;  %s4374_s19 = sshll.u32 %s4527_s17, 4  ;;  %s4375_s19 = int_to_ptr.vmem [resolvable:$false] %s4374_s19 }
 0x129   : > { %s4376_s30 = scalar_lea.vmem %s4375_s19, 32  ;;  %p4377_p11 = scmp.lt.s32.totalorder %s542_s8, %s4375_s19 }
 0x12a   : > { %p4372_p10 = pnand %p4370_p3, %p5437_p6  ;;  %p4378_p0 = scmp.lt.s32.totalorder %s4376_s30, %s4369_s23 }
 0x12c   : > { %p4373_p4 = pneg %p4372_p10  ;;  %p4379_p7 = por %p4378_p0, %p4377_p11 }
 0x12e   : > { %p4380_p1 = pnand %p4379_p7, %p4373_p4 }
 0x130   : > { %4383 = shalt.err (!%p4380_p1)
}
 0x131   : > { %p5444_p9 = scmp.ne.s32.totalorder %s5420_s24, 0  ;;  %s5445_s0 = scalar_lea.sflag [#allocation15], %s4644_s27 }
 0x132   : > { %s568_s3 = scalar_lea.vmem [#allocation19], %s4647_s28  ;;  %s4384_s20 = scalar_lea.hbm %s4987_s29, 16 }
 0x133   : > { %3973 = dma.hbm_to_vmem [thread:$0]  (!%p5444_p9), %s4961_s16, 16, %s542_s8, %s5445_s0  }
 0x134   : > { %s575_s2 = sshll.u32 %s568_s3, 4  ;;  %p4385_p12 = scmp.ne.s32.totalorder %s4987_s29, %s4384_s20  ;;  %s576_s2 = int_to_ptr.vmem [resolvable:$true] %s575_s2 }
 0x135   : > { %s4389_s6 = scalar_lea.hbm %s5443_s11, 32  ;;  %p4390_p8 = scmp.lt.u32.totalorder %s4987_s29, %s5443_s11 }
 0x136   : > { %p4387_p7 = pnand %p4385_p12, %p5437_p6  ;;  %p4391_p13 = scmp.lt.u32.totalorder %s4389_s6, %s4384_s20 }
 0x137   : > { %p4393_p3 = scmp.lt.u32.totalorder %s4384_s20, %s4987_s29 }
 0x138   : > { %p4388_p2 = pneg %p4387_p7  ;;  %p4392_p5 = por %p4391_p13, %p4390_p8 }
 0x13a   : > { %p4394_p10 = por %p4393_p3, %p4392_p5 }
 0x13c   : > { %p4395_p4 = pnand %p4394_p10, %p4388_p2 }
 0x13e   : > { %4398 = shalt.err (!%p4395_p4)
}
 0x13f   : > { %s4399_s28 = scalar_lea.vmem %s576_s2, 16  ;;  %s4528_s16 = smov [#allocation19]  }
 0x140   : > { %p4400_p11 = scmp.ne.s32.totalorder %s576_s2, %s4399_s28  ;;  %s4404_s8 = sshll.u32 %s4528_s16, 4  ;;  %s4405_s8 = int_to_ptr.vmem [resolvable:$false] %s4404_s8 }
 0x141   : > { %s4406_s23 = scalar_lea.vmem %s4405_s8, 32  ;;  %p4407_p12 = scmp.lt.s32.totalorder %s576_s2, %s4405_s8 }
 0x142   : > { %p4402_p0 = pnand %p4400_p11, %p5437_p6  ;;  %p4408_p7 = scmp.lt.s32.totalorder %s4406_s23, %s4399_s28 }
 0x144   : > { %p4403_p1 = pneg %p4402_p0  ;;  %p4409_p9 = por %p4408_p7, %p4407_p12 }
 0x146   : > { %p4410_p8 = pnand %p4409_p9, %p4403_p1 }
 0x148   : > { %4413 = shalt.err (!%p4410_p8)
}
 0x149   : > { %p5446_p13 = scmp.ne.s32.totalorder %s5420_s24, 0  ;;  %s5447_s17 = scalar_lea.sflag [#allocation18], %s4644_s27 }
 0x14a   : > { %p5448_p2 = scmp.ne.s32.totalorder %s5430_s26, 0 }
 0x14b   : > { %3979 = dma.hbm_to_vmem [thread:$0]  (!%p5446_p13), %s4987_s29, 16, %s576_s2, %s5447_s17  }
 0x14c   : > { %584 = sbr.rel (%p5448_p2) target bundleno = 3508 (0xdb4), region = 64  ;;  %p5449_p6 = scmp.eq.s32.totalorder (!%p5448_p2), %s4838_s10, 0 }
 0x153   : > { %4465 = dma.done.wait (%p5449_p6), [#allocation3], 256   ;;  %p5450_p5 = pmov %p5449_p6 }
 0x154   : > { %s590_s14 = sand.u32 1, %s4838_s10   ;;  %s5036_s19 = sand.u32 1, %s4498_s18  }
 0x155   : > { %4467 = vsyncadd (%p5450_p5), [#allocation3], 4294967040  ;;  %s3605_s24 = sshll.u32 %s5036_s19, 5  ;;  %s591_s27 = scalar_lea.sflag [#allocation6], %s590_s14 }
 0x156   : > { %s5039_s30 = scalar_lea.vmem [#allocation5], %s3605_s24  ;;  %p5451_p9 = scmp.ne.s32.totalorder %s5429_s25, 0 }
 0x158   : > { %4469 = dma.done.wait (%p5451_p9), %s591_s27, 1024  }
 0x159   : > { %4471 = vsyncadd (%p5451_p9), %s591_s27, 4294966272  ;;  %s5045_s26 = scalar_lea.vmem [#allocation7], %s3605_s24  ;;  %s609_s29 = scalar_lea.sflag [#allocation9], %s590_s14 }
 0x15a   : > { %s611_s0 = scalar_lea.vmem [#allocation8], %s5036_s19 }
 0x15b   : > { %4473 = dma.done.wait (%p5451_p9), %s609_s29, 32  }
 0x15c   : > { %4475 = vsyncadd (%p5451_p9), %s609_s29, 4294967264  ;;  %s619_s3 = scalar_lea.vmem [#allocation10], %s5036_s19  ;;  %s625_s2 = scalar_lea.sflag [#allocation12], %s590_s14 }
 0x15d   : > { %s5053_s20 = scalar_lea.vmem [#allocation11], %s3605_s24 }
 0x15e   : > { %4477 = dma.done.wait (%p5451_p9), %s625_s2, 528  }
 0x15f   : > { %4479 = vsyncadd (%p5451_p9), %s625_s2, 4294966768  ;;  %s3608_s5 = sshll.u32 %s5036_s19, 6  ;;  %s636_s1 = scalar_lea.vmem [#allocation13], %s5036_s19 }
 0x160   : > { %s642_s6 = scalar_lea.sflag [#allocation15], %s590_s14  ;;  %s5061_s7 = scalar_lea.vmem [#allocation14], %s3608_s5 }
 0x161   : > { %4481 = dma.done.wait (%p5451_p9), %s642_s6, 1040  }
 0x162   : > { %4483 = vsyncadd (%p5451_p9), %s642_s6, 4294966256  ;;  %s653_s13 = scalar_lea.vmem [#allocation16], %s5036_s19  ;;  %s659_s28 = scalar_lea.sflag [#allocation18], %s590_s14 }
 0x163   : > { %s661_s16 = scalar_lea.vmem [#allocation17], %s5036_s19 }
 0x164   : > { %4485 = dma.done.wait (%p5451_p9), %s659_s28, 32  }
 0x165   : > { %4487 = vsyncadd (%p5451_p9), %s659_s28, 4294967264  ;;  %s669_s8 = scalar_lea.vmem [#allocation19], %s5036_s19  ;;  %s5452_s23 = sld [smem:[#allocation29_spill]] }
 0x16b   : > { %p3609_p3 = scmp.ne.s32.totalorder %s5452_s23, 0 }
 0x16c   : > { %v748_v0 = vld [vmem:[#allocation2] sm:$0xff] (!%p3609_p3)  ;;  %vm750_vm0 = vcmask (!%p3609_p3), 261120   ;;  %v749_v1 = vld [vmem:[#allocation2 + $0x8] sm:$0xff] (!%p3609_p3) }
 0x16d   : > { %747 = sbr.rel (%p3609_p3) target bundleno = 372 (0x174), region = 112  ;;  %751 = vst.msk [vmem:[#allocation20] sm:$0xff] (!%p3609_p3), %vm750_vm0, %v748_v0  ;;  %752 = vst.msk [vmem:[#allocation20 + $0x8] sm:$0xff] (!%p3609_p3), %vm750_vm0, %v749_v1 }
 0x174 PF: > { %v755_v2 = vld [vmem:[%s5039_s30] sm:$0xff]  ;;  %v756_v3 = vld [vmem:[%s5039_s30 + $0x8] sm:$0xff]  ;;  %v757_v4 = vld [vmem:[%s5039_s30 + $0x10] sm:$0xff]  ;;  %vm759_vm1 = vcmask 261120   ;;  %s4529_s25 = smov 104   ;;  %s4530_s17 = smov 120  }
 0x175   : > { %v3885_v5 = vpack.c.bf16 %v756_v3, %v755_v2  ;;  %v758_v6 = vld [vmem:[%s5039_s30 + $0x18] sm:$0xff]  ;;  %v5079_v7 = vld [vmem:[#allocation20] sm:$0xff]  ;;  %s4531_s14 = smov 96   ;;  %s4532_s24 = smov 112   ;;  %v4533_v16 = vmov 0.0   ;;  %vm4534_vm2 = vmmov 0  }
 0x176   : > { %v3889_v8 = vpack.c.bf16 %v758_v6, %v757_v4  ;;  %3732 = vmatprep.mubr.msk.f32.mxu0 %vm759_vm1, %v5079_v7  ;;  %v5083_v9 = vld [vmem:[#allocation20 + $0x8] sm:$0xff]  ;;  %3735 = vmatprep.subr.mxu1 %v4533_v16  ;;  %s4535_s27 = smov 64   ;;  %vm1001_vm3 = vcmask 64512   ;;  %v5176_v0 = vld [vmem:[%s5045_s26] sm:$0xff]  ;;  %vm3190_vm4 = vcmask 523264   ;;  %s4536_s30 = smov [#allocation20]  }
 0x177   : > { %3886 = vmatprep.subr.bf16.mxu0 %v3885_v5  ;;  %3737 = vmatprep.mubr.msk.f32.mxu1 %vm4534_vm2, %v4533_v16  ;;  %p3983_p10 = scmp.eq.s32.totalorder %s4838_s10, 1 }
 0x178   : > { %3888 = vmatpush3.bf16.msra.mxu0 %v3885_v5  ;;  %v5191_v5 = vld [vmem:[%s5045_s26 + $0x8] sm:$0xff] }
 0x179   : > { %3890 = vmatprep.subr.bf16.mxu0 %v3889_v8 }
 0x17c   : > { %3892 = vmatpush3.bf16.msra.mxu0 %v3889_v8 }
 0x17d   : > { %3760 = vmatprep.subr.mxu0 %v4533_v16 }
 0x17f   : > { %3733 = vmatmul.mubr.msk.f32.vlgmr.msra.gmra.mrb[0].mxu0 %vm759_vm1, %v5083_v9 }
 0x180   : > { %3762 = vmatprep.mubr.msk.f32.mxu0 %vm4534_vm2, %v4533_v16 }
 0x252   : > { %v5087_v10 = vpop.f32.mrb[0].mxu0 }
 0x253   : > { %v832_v11 = vpop.f32.mrb[1].mxu0  ;;  %v842_v4 = vmul.f32 0.35355338, %v5087_v10 }
 0x254   : > { %859 = vrot.lane.b32.xlu1 %v832_v11, %s4529_s25  ;;  %855 = vrot.lane.b32.xlu0 %v832_v11, %s4530_s17  ;;  %v841_v15 = vmul.f32 0.35355338, %v832_v11 }
 0x258   : > { %861 = vrot.lane.b32.xlu1 %v832_v11, %s4531_s14  ;;  %857 = vrot.lane.b32.xlu0 %v832_v11, %s4532_s24 }
 0x2c6   : > { %v5093_v12 = vpop.permute.xlu0 %855  ;;  %v5097_v13 = vpop.permute.xlu1 %859 }
 0x2c7   : > { %863 = vrot.lane.b32.xlu0 %v5093_v12, %s4531_s14 }
 0x2ca   : > { %v5099_v14 = vpop.permute.xlu0 %857  ;;  %v862_v17 = vpop.permute.xlu1 %861 }
 0x2cb   : > { %867 = vrot.lane.b32.xlu0 %v5097_v13, %s4531_s14  ;;  %865 = vrot.lane.b32.xlu1 %v5099_v14, %s4531_s14 }
 0x2cf   : > { %850 = vrot.lane.b32.xlu0 %v841_v15, %s4532_s24  ;;  %848 = vrot.lane.b32.xlu1 %v841_v15, %s4530_s17 }
 0x2d3   : > { %852 = vrot.lane.b32.xlu1 %v841_v15, %s4529_s25 }
 0x2ed   : > { %873 = vxpose.xlu0.b32.start.end [1/1] (short) (narrow) %v862_v17, 8 }
 0x339   : > { %v864_v18 = vpop.permute.xlu0 %863 }
 0x33a   : > { %905 = vxpose.xlu1.b32.start.end [1/1] (short) (narrow) %v864_v18, 8 }
 0x33d   : > { %v866_v19 = vpop.permute.xlu1 %865  ;;  %v868_v20 = vpop.permute.xlu0 %867 }
 0x33e   : > { %937 = vxpose.xlu0.b32.start.end [1/1] (short) (narrow) %v866_v19, 8  ;;  %v5196_v19 = vld [vmem:[%s5045_s26 + $0x10] sm:$0xff] }
 0x341   : > { %v851_v21 = vpop.permute.xlu0 %850  ;;  %v849_v23 = vpop.permute.xlu1 %848 }
 0x342   : > { %969 = vxpose.xlu0.b32.start.end [1/1] (short) (narrow) %v868_v20, 8 }
 0x345   : > { %v853_v24 = vpop.permute.xlu1 %852 }
 0x358   : > { %1334 = vrot.lane.b32.xlu1 %v832_v11, %s4535_s27 }
 0x36d   : > { %v889_v22 = vpop.trf.xlu0 }
 0x36e   : > { %3736 = vmatpush3.msra.mxu1 %v889_v22 }
 0x36f   : > { %3738 = vmatmul.mubr.msk.f32.vlgmr.msra.gmra.mrb[0].mxu1 %vm1001_vm3, %v841_v15  ;;  %3740 = vmatprep.subr.mxu1 %v4533_v16 }
 0x370   : > { %3742 = vmatprep.mubr.msk.f32.mxu1 %vm4534_vm2, %v4533_v16 }
 0x3ba   : > { %v921_v25 = vpop.trf.xlu1 }
 0x3bb   : > { %3741 = vmatpush3.msra.mxu1 %v921_v25 }
 0x3bc   : > { %3743 = vmatmul.mubr.msk.f32.vlgmr.msra.gmra.mrb[2].mxu1 %vm1001_vm3, %v849_v23  ;;  %3745 = vmatprep.subr.mxu1 %v4533_v16 }
 0x3bd   : > { %3747 = vmatprep.mubr.msk.f32.mxu1 %vm4534_vm2, %v4533_v16 }
 0x3be   : > { %v953_v26 = vpop.trf.xlu0 }
 0x3bf   : > { %3746 = vmatpush3.msra.mxu1 %v953_v26 }
 0x3c0   : > { %3748 = vmatmul.mubr.msk.f32.vlgmr.msra.gmra.mrb[4].mxu1 %vm1001_vm3, %v851_v21  ;;  %3750 = vmatprep.subr.mxu1 %v4533_v16 }
 0x3c1   : > { %3752 = vmatprep.mubr.msk.f32.mxu1 %vm4534_vm2, %v4533_v16 }
 0x3c2   : > { %v985_v27 = vpop.trf.xlu0 }
 0x3c3   : > { %3751 = vmatpush3.msra.mxu1 %v985_v27  ;;  %v5206_v27 = vld [vmem:[%s5045_s26 + $0x18] sm:$0xff]  ;;  %s3329_s26 = sshll.u32 %s4536_s30, 4  ;;  %s3330_s26 = int_to_ptr.vmem [resolvable:$true] %s3329_s26 }
 0x3c4   : > { %3753 = vmatmul.mubr.msk.f32.vlgmr.msra.gmra.mrb[6].mxu1 %vm1001_vm3, %v853_v24  ;;  %3755 = vmatprep.subr.mxu1 %v4533_v16  ;;  %s4414_s29 = scalar_lea.vmem %s3330_s26, 256  ;;  %p4421_p1 = scmp.lt.s32.totalorder %s3330_s26, %s3330_s26 }
 0x3c5   : > { %3757 = vmatprep.mubr.msk.f32.mxu1 %vm4534_vm2, %v4533_v16  ;;  %p4415_p4 = scmp.ne.s32.totalorder %s3330_s26, %s4414_s29  ;;  %p4422_p12 = scmp.lt.s32.totalorder %s4414_s29, %s4414_s29 }
 0x3c7   : > { %p4416_p11 = pnand %p4415_p4, %p3983_p10  ;;  %p4423_p7 = por %p4422_p12, %p4421_p1 }
 0x3c9   : > { %p4417_p0 = pneg %p4416_p11 }
 0x3ca   : > { %v1335_v28 = vpop.permute.xlu1 %1334 }
 0x3cb   : > { %3756 = vmatpush3.msra.mxu1 %v1335_v28  ;;  %p4424_p8 = pnand %p4423_p7, %p4417_p0 }
 0x3cc   : > { %3765 = vmatprep.subr.mxu1 %v4533_v16 }
 0x442   : > { %v1070_v29 = vpop.f32.mrb[0].mxu1 }
 0x443   : > { %v3739_v30 = vpop.f32.mrb[1].mxu1  ;;  %v1290_v31 = vsel %vm1001_vm3, %v1070_v29, -inf }
 0x444   : > { %1291 = vmax.xlane.f32.xlu0 %v1290_v31 }
 0x48f   : > { %v1142_v32 = vpop.f32.mrb[2].mxu1 }
 0x490   : > { %v3744_v33 = vpop.f32.mrb[3].mxu1  ;;  %v1293_v34 = vsel %vm1001_vm3, %v1142_v32, -inf }
 0x491   : > { %1294 = vmax.xlane.f32.xlu1 %v1293_v34 }
 0x493   : > { %v1214_v35 = vpop.f32.mrb[4].mxu1 }
 0x494   : > { %v3749_v36 = vpop.f32.mrb[5].mxu1  ;;  %v1296_v37 = vsel %vm1001_vm3, %v1214_v35, -inf }
 0x495   : > { %1297 = vmax.xlane.f32.xlu1 %v1296_v37 }
 0x497   : > { %v1286_v38 = vpop.f32.mrb[6].mxu1 }
 0x498   : > { %v3754_v39 = vpop.f32.mrb[7].mxu1  ;;  %v1299_v40 = vsel %vm1001_vm3, %v1286_v38, -inf }
 0x499   : > { %1300 = vmax.xlane.f32.xlu0 %v1299_v40 }
 0x4a6   : > { %1486 = vrot.lane.b32.xlu1 %v5099_v14, %s4535_s27 }
 0x4aa   : > { %1562 = vrot.lane.b32.xlu1 %v5097_v13, %s4535_s27 }
 0x4ae   : > { %1951 = vrot.lane.b32.xlu1 %v5087_v10, %s4532_s24 }
 0x4af   : > { %1410 = vrot.lane.b32.xlu0 %v5093_v12, %s4535_s27 }
 0x4b2   : > { %1955 = vrot.lane.b32.xlu1 %v5087_v10, %s4531_s14 }
 0x4b3   : > { %1949 = vrot.lane.b32.xlu0 %v5087_v10, %s4530_s17 }
 0x4b7   : > { %1953 = vrot.lane.b32.xlu0 %v5087_v10, %s4529_s25 }
 0x4d1   : > { %v1292_v41 = vpop.xlane.xlu0 %1291 }
 0x4d2   : > { %v1302_v42 = vsub.f32 %v1070_v29, %v1292_v41 }
 0x4d4   : > { %v1306_v43 = vmul.f32 1.442695, %v1302_v42 }
 0x4d6   : > { %4046 = vpow2.f32 %v1306_v43 }
 0x4e0   : > { %v4047_v44 = vpop.eup %4046 }
 0x4e1   : > { %3758 = vmatmul.mubr.msk.f32.vlgmr.msra.gmra.mrb[8].mxu1 %vm1001_vm3, %v4047_v44  ;;  %v1314_v45 = vsel %vm1001_vm3, %v4047_v44, 0.0 }
 0x4e2   : > { %1315 = vadd.xlane.f32.xlu0 %v1314_v45  ;;  %3767 = vmatprep.mubr.msk.f32.mxu1 %vm4534_vm2, %v4533_v16 }
 0x51e   : > { %v1295_v46 = vpop.xlane.xlu1 %1294 }
 0x51f   : > { %v1303_v47 = vsub.f32 %v1142_v32, %v1295_v46 }
 0x521   : > { %v1308_v48 = vmul.f32 1.442695, %v1303_v47 }
 0x522   : > { %v1298_v49 = vpop.xlane.xlu1 %1297 }
 0x523   : > { %4048 = vpow2.f32 %v1308_v48  ;;  %v1304_v50 = vsub.f32 %v1214_v35, %v1298_v49 }
 0x525   : > { %v1310_v51 = vmul.f32 1.442695, %v1304_v50 }
 0x526   : > { %v1301_v52 = vpop.xlane.xlu0 %1300  ;;  %v1487_v53 = vpop.permute.xlu1 %1486 }
 0x527   : > { %4050 = vpow2.f32 %v1310_v51  ;;  %v1305_v54 = vsub.f32 %v1286_v38, %v1301_v52  ;;  %3766 = vmatpush3.msra.mxu1 %v1487_v53 }
 0x528   : > { %3775 = vmatprep.subr.mxu1 %v4533_v16 }
 0x529   : > { %v1312_v55 = vmul.f32 1.442695, %v1305_v54 }
 0x52a   : > { %v1411_v56 = vpop.permute.xlu0 %1410  ;;  %v1563_v57 = vpop.permute.xlu1 %1562 }
 0x52b   : > { %4052 = vpow2.f32 %v1312_v55  ;;  %3761 = vmatpush3.msra.mxu0 %v1411_v56 }
 0x52c   : > { %3770 = vmatprep.subr.mxu0 %v4533_v16 }
 0x52d   : > { %v4049_v58 = vpop.eup %4048 }
 0x52e   : > { %v5156_v59 = vpop.permute.xlu0 %1949  ;;  %3763 = vmatmul.mubr.msk.f32.vlgmr.msra.gmra.mrb[2].mxu0 %vm1001_vm3, %v4049_v58  ;;  %v5159_v60 = vpop.permute.xlu1 %1951  ;;  %v1317_v2 = vsel %vm1001_vm3, %v4049_v58, 0.0 }
 0x52f   : > { %3771 = vmatpush3.msra.mxu0 %v1563_v57  ;;  %1957 = vrot.lane.b32.xlu1 %v5156_v59, %s4531_s14 }
 0x530   : > { %1959 = vrot.lane.b32.xlu0 %v5159_v60, %s4531_s14  ;;  %3772 = vmatprep.mubr.msk.f32.mxu0 %vm4534_vm2, %v4533_v16 }
 0x531   : > { %v4051_v61 = vpop.eup %4050  ;;  %3780 = vmatprep.subr.mxu0 %v4533_v16 }
 0x532   : > { %v5168_v62 = vpop.permute.xlu0 %1953  ;;  %3768 = vmatmul.mubr.msk.f32.vlgmr.msra.gmra.mrb[10].mxu1 %vm1001_vm3, %v4051_v61  ;;  %v1320_v3 = vsel %vm1001_vm3, %v4051_v61, 0.0  ;;  %v1956_v6 = vpop.permute.xlu1 %1955 }
 0x533   : > { %1961 = vrot.lane.b32.xlu1 %v5168_v62, %s4531_s14  ;;  %3777 = vmatprep.mubr.msk.f32.mxu1 %vm4534_vm2, %v4533_v16 }
 0x534   : > { %3776 = vmatpush3.msra.mxu1 %v5176_v0 }
 0x535   : > { %v4053_v63 = vpop.eup %4052  ;;  %3785 = vmatprep.subr.mxu1 %v4533_v16 }
 0x536   : > { %3773 = vmatmul.mubr.msk.f32.vlgmr.msra.gmra.mrb[4].mxu0 %vm1001_vm3, %v4053_v63  ;;  %v1323_v1 = vsel %vm1001_vm3, %v4053_v63, 0.0 }
 0x537   : > { %3782 = vmatprep.mubr.msk.f32.mxu0 %vm4534_vm2, %v4533_v16  ;;  %3781 = vmatpush3.msra.mxu0 %v5191_v5 }
 0x538   : > { %3790 = vmatprep.subr.mxu0 %v4533_v16 }
 0x54f   : > { %1324 = vadd.xlane.f32.xlu0 %v1323_v1 }
 0x557   : > { %1318 = vadd.xlane.f32.xlu1 %v1317_v2 }
 0x55b   : > { %1321 = vadd.xlane.f32.xlu1 %v1320_v3 }
 0x56c   : > { %1942 = vrot.lane.b32.xlu1 %v842_v4, %s4530_s17 }
 0x56f   : > { %v1316_v8 = vpop.xlane.xlu0 %1315 }
 0x570   : > { %1944 = vrot.lane.b32.xlu1 %v842_v4, %s4532_s24  ;;  %4054 = vrcp.f32 %v1316_v8 }
 0x574   : > { %1946 = vrot.lane.b32.xlu1 %v842_v4, %s4529_s25 }
 0x57a   : > { %v4055_v14 = vpop.eup %4054 }
 0x59d   : > { %1967 = vxpose.xlu1.b32.start.end [1/1] (short) (narrow) %v1956_v6, 8 }
 0x5a1   : > { %v1958_v11 = vpop.permute.xlu1 %1957 }
 0x5a2   : > { %v1960_v12 = vpop.permute.xlu0 %1959  ;;  %1999 = vxpose.xlu0.b32.start.end [1/1] (short) (narrow) %v1958_v11, 8 }
 0x5a3   : > { %2031 = vxpose.xlu1.b32.start.end [1/1] (short) (narrow) %v1960_v12, 8 }
 0x5a5   : > { %v1962_v13 = vpop.permute.xlu1 %1961 }
 0x5a7   : > { %2063 = vxpose.xlu1.b32.start.end [1/1] (short) (narrow) %v1962_v13, 8 }
 0x5b4   : > { %v1406_v15 = vpop.f32.mrb[8].mxu1 }
 0x5b5   : > { %v1638_v17 = vmul.f32 %v4055_v14, %v1406_v15  ;;  %v3759_v18 = vpop.f32.mrb[9].mxu1 }
 0x5b7   : > { %3778 = vmatmul.mubr.msk.f32.vlgmr.msra.gmra.mrb[12].mxu1 %vm1001_vm3, %v1638_v17 }
 0x5b8   : > { %3786 = vmatpush3.msra.mxu1 %v5196_v19  ;;  %3787 = vmatprep.mubr.msk.f32.mxu1 %vm4534_vm2, %v4533_v16 }
 0x5b9   : > { %3795 = vmatprep.subr.mxu1 %v4533_v16 }
 0x5c5   : > { %2427 = vrot.lane.b32.xlu1 %v5087_v10, %s4535_s27 }
 0x5dc   : > { %v1325_v22 = vpop.xlane.xlu0 %1324 }
 0x5e4   : > { %v1319_v20 = vpop.xlane.xlu1 %1318 }
 0x5e5   : > { %4056 = vrcp.f32 %v1319_v20 }
 0x5e8   : > { %v1322_v21 = vpop.xlane.xlu1 %1321 }
 0x5e9   : > { %4058 = vrcp.f32 %v1322_v21 }
 0x5ea   : > { %4060 = vrcp.f32 %v1325_v22 }
 0x5ec   : > { %v1943_v35 = vpop.permute.xlu1 %1942 }
 0x5ef   : > { %v4057_v23 = vpop.eup %4056 }
 0x5f0   : > { %v1945_v36 = vpop.permute.xlu1 %1944 }
 0x5f3   : > { %v4059_v28 = vpop.eup %4058 }
 0x5f4   : > { %v4061_v31 = vpop.eup %4060  ;;  %v1947_v37 = vpop.permute.xlu1 %1946 }
 0x601   : > { %v1482_v24 = vpop.f32.mrb[2].mxu0 }
 0x602   : > { %v1639_v25 = vmul.f32 %v4057_v23, %v1482_v24  ;;  %v3764_v26 = vpop.f32.mrb[3].mxu0 }
 0x604   : > { %3783 = vmatmul.mubr.msk.f32.vlgmr.msra.gmra.mrb[6].mxu0 %vm1001_vm3, %v1639_v25 }
 0x605   : > { %v1558_v29 = vpop.f32.mrb[10].mxu1  ;;  %3791 = vmatpush3.msra.mxu0 %v5206_v27  ;;  %3792 = vmatprep.mubr.msk.f32.mxu0 %vm4534_vm2, %v4533_v16 }
 0x606   : > { %v1640_v10 = vmul.f32 %v4059_v28, %v1558_v29  ;;  %v3769_v30 = vpop.f32.mrb[11].mxu1  ;;  %3800 = vmatprep.subr.mxu0 %v4533_v16 }
 0x608   : > { %3788 = vmatmul.mubr.msk.f32.vlgmr.msra.gmra.mrb[14].mxu1 %vm1001_vm3, %v1640_v10 }
 0x609   : > { %v1634_v32 = vpop.f32.mrb[4].mxu0  ;;  %3797 = vmatprep.mubr.msk.f32.mxu1 %vm4534_vm2, %v4533_v16 }
 0x60a   : > { %v1641_v33 = vmul.f32 %v4061_v31, %v1634_v32  ;;  %v3774_v34 = vpop.f32.mrb[5].mxu0 }
 0x60c   : > { %3793 = vmatmul.mubr.msk.f32.vlgmr.msra.gmra.mrb[8].mxu0 %vm1001_vm3, %v1641_v33 }
 0x60d   : > { %3802 = vmatprep.mubr.msk.f32.mxu0 %vm4534_vm2, %v4533_v16 }
 0x61d   : > { %v1983_v38 = vpop.trf.xlu1 }
 0x61e   : > { %3796 = vmatpush3.msra.mxu1 %v1983_v38 }
 0x61f   : > { %3798 = vmatmul.mubr.msk.f32.vlgmr.msra.gmra.mrb[16].mxu1 %vm1001_vm3, %v842_v4  ;;  %3805 = vmatprep.subr.mxu1 %v4533_v16 }
 0x620   : > { %3807 = vmatprep.mubr.msk.f32.mxu1 %vm4534_vm2, %v4533_v16 }
 0x622   : > { %v2015_v39 = vpop.trf.xlu0 }
 0x623   : > { %v2047_v40 = vpop.trf.xlu1  ;;  %3801 = vmatpush3.msra.mxu0 %v2015_v39 }
 0x624   : > { %3806 = vmatpush3.msra.mxu1 %v2047_v40  ;;  %3803 = vmatmul.mubr.msk.f32.vlgmr.msra.gmra.mrb[10].mxu0 %vm1001_vm3, %v1943_v35 }
 0x625   : > { %3808 = vmatmul.mubr.msk.f32.vlgmr.msra.gmra.mrb[18].mxu1 %vm1001_vm3, %v1945_v36  ;;  %3810 = vmatprep.subr.mxu0 %v4533_v16 }
 0x626   : > { %3812 = vmatprep.mubr.msk.f32.mxu0 %vm4534_vm2, %v4533_v16  ;;  %3815 = vmatprep.subr.mxu1 %v4533_v16 }
 0x627   : > { %v2079_v41 = vpop.trf.xlu1  ;;  %3817 = vmatprep.mubr.msk.f32.mxu1 %vm4534_vm2, %v4533_v16 }
 0x628   : > { %3811 = vmatpush3.msra.mxu0 %v2079_v41 }
 0x629   : > { %3813 = vmatmul.mubr.msk.f32.vlgmr.msra.gmra.mrb[12].mxu0 %vm1001_vm3, %v1947_v37  ;;  %3820 = vmatprep.subr.mxu0 %v4533_v16 }
 0x62a   : > { %3822 = vmatprep.mubr.msk.f32.mxu0 %vm4534_vm2, %v4533_v16 }
 0x637   : > { %v2428_v42 = vpop.permute.xlu1 %2427 }
 0x638   : > { %3816 = vmatpush3.msra.mxu1 %v2428_v42 }
 0x639   : > { %3825 = vmatprep.subr.mxu1 %v4533_v16 }
 0x68a   : > { %v1711_v43 = vpop.f32.mrb[12].mxu1 }
 0x68b   : > { %v3779_v44 = vpop.f32.mrb[13].mxu1  ;;  %v1934_v46 = vsel %vm759_vm1, %v1711_v43, 0.0 }
 0x6d7   : > { %v1784_v45 = vpop.f32.mrb[6].mxu0 }
 0x6d8   : > { %v1935_v47 = vsel %vm759_vm1, %v1784_v45, 0.0  ;;  %v3784_v48 = vpop.f32.mrb[7].mxu0 }
 0x6d9   : > { %v1936_v49 = vadd.f32 %v1935_v47, %v1934_v46 }
 0x6db   : > { %v1857_v50 = vpop.f32.mrb[14].mxu1 }
 0x6dc   : > { %v1937_v51 = vsel %vm759_vm1, %v1857_v50, 0.0  ;;  %v3789_v52 = vpop.f32.mrb[15].mxu1 }
 0x6dd   : > { %v1938_v53 = vadd.f32 %v1937_v51, %v1936_v49 }
 0x6df   : > { %v1930_v54 = vpop.f32.mrb[8].mxu0 }
 0x6e0   : > { %v1939_v55 = vsel %vm759_vm1, %v1930_v54, 0.0  ;;  %v3794_v56 = vpop.f32.mrb[9].mxu0 }
 0x6e1   : > { %v1940_v57 = vadd.f32 %v1939_v55, %v1938_v53 }
 0x6e3   : > { %v3034_v34 = vadd.f32 %v1940_v57, %v5079_v7 }
 0x6e5   : > { %v3038_v36 = vsel %vm759_vm1, %v3034_v34, 0.0 }
 0x6f2   : > { %v2163_v58 = vpop.f32.mrb[16].mxu1 }
 0x6f3   : > { %v3799_v61 = vpop.f32.mrb[17].mxu1  ;;  %v2383_v63 = vsel %vm1001_vm3, %v2163_v58, -inf }
 0x6f4   : > { %2384 = vmax.xlane.f32.xlu1 %v2383_v63 }
 0x6f7   : > { %v2235_v1 = vpop.f32.mrb[10].mxu0 }
 0x6f8   : > { %v2307_v2 = vpop.f32.mrb[18].mxu1  ;;  %v3804_v3 = vpop.f32.mrb[11].mxu0  ;;  %v2386_v4 = vsel %vm1001_vm3, %v2235_v1, -inf }
 0x6f9   : > { %v3809_v6 = vpop.f32.mrb[19].mxu1  ;;  %2387 = vmax.xlane.f32.xlu0 %v2386_v4  ;;  %v2389_v12 = vsel %vm1001_vm3, %v2307_v2, -inf  ;;  %v3637_v3 = vld [vmem:[%s619_s3] ss:$0 sm:$0xff] }
 0x6fc   : > { %v2379_v8 = vpop.f32.mrb[12].mxu0 }
 0x6fd   : > { %v3814_v11 = vpop.f32.mrb[13].mxu0  ;;  %v2392_v13 = vsel %vm1001_vm3, %v2379_v8, -inf }
 0x705   : > { %2579 = vrot.lane.b32.xlu1 %v5159_v60, %s4535_s27 }
 0x70f   : > { %2503 = vrot.lane.b32.xlu0 %v5156_v59, %s4535_s27 }
 0x729   : > { %2390 = vmax.xlane.f32.xlu1 %v2389_v12 }
 0x72d   : > { %2393 = vmax.xlane.f32.xlu1 %v2392_v13 }
 0x73e   : > { %2655 = vrot.lane.b32.xlu1 %v5168_v62, %s4535_s27 }
 0x781   : > { %v2385_v14 = vpop.xlane.xlu1 %2384 }
 0x782   : > { %v2395_v15 = vsub.f32 %v2163_v58, %v2385_v14 }
 0x784   : > { %v2399_v17 = vmul.f32 1.442695, %v2395_v15 }
 0x785   : > { %v2580_v22 = vpop.permute.xlu1 %2579 }
 0x786   : > { %4062 = vpow2.f32 %v2399_v17  ;;  %v2388_v18 = vpop.xlane.xlu0 %2387 }
 0x787   : > { %v2396_v20 = vsub.f32 %v2235_v1, %v2388_v18  ;;  %v3636_v1 = vld [vmem:[%s611_s0] ss:$0 sm:$0xff] }
 0x789   : > { %v2401_v21 = vmul.f32 1.442695, %v2396_v20 }
 0x78a   : > { %v2504_v60 = vpop.permute.xlu0 %2503 }
 0x78b   : > { %4064 = vpow2.f32 %v2401_v21  ;;  %3821 = vmatpush3.msra.mxu0 %v2504_v60 }
 0x78c   : > { %3830 = vmatprep.subr.mxu0 %v4533_v16 }
 0x790   : > { %v4063_v59 = vpop.eup %4062 }
 0x791   : > { %3818 = vmatmul.mubr.msk.f32.vlgmr.msra.gmra.mrb[20].mxu1 %vm1001_vm3, %v4063_v59  ;;  %v2407_v23 = vsel %vm1001_vm3, %v4063_v59, 0.0 }
 0x792   : > { %3826 = vmatpush3.msra.mxu1 %v2580_v22  ;;  %2408 = vadd.xlane.f32.xlu1 %v2407_v23 }
 0x793   : > { %3827 = vmatprep.mubr.msk.f32.mxu1 %vm4534_vm2, %v4533_v16  ;;  %3835 = vmatprep.subr.mxu1 %v4533_v16 }
 0x795   : > { %v4065_v62 = vpop.eup %4064 }
 0x796   : > { %3823 = vmatmul.mubr.msk.f32.vlgmr.msra.gmra.mrb[14].mxu0 %vm1001_vm3, %v4065_v62  ;;  %v2410_v24 = vsel %vm1001_vm3, %v4065_v62, 0.0 }
 0x797   : > { %2411 = vadd.xlane.f32.xlu0 %v2410_v24  ;;  %3832 = vmatprep.mubr.msk.f32.mxu0 %vm4534_vm2, %v4533_v16 }
 0x7b6   : > { %v2391_v25 = vpop.xlane.xlu1 %2390 }
 0x7b7   : > { %v2397_v26 = vsub.f32 %v2307_v2, %v2391_v25 }
 0x7b9   : > { %v2403_v28 = vmul.f32 1.442695, %v2397_v26 }
 0x7ba   : > { %v2394_v29 = vpop.xlane.xlu1 %2393 }
 0x7bb   : > { %4066 = vpow2.f32 %v2403_v28  ;;  %v2398_v10 = vsub.f32 %v2379_v8, %v2394_v29 }
 0x7bd   : > { %v2405_v30 = vmul.f32 1.442695, %v2398_v10 }
 0x7be   : > { %v2656_v31 = vpop.permute.xlu1 %2655 }
 0x7bf   : > { %4068 = vpow2.f32 %v2405_v30  ;;  %3831 = vmatpush3.msra.mxu0 %v2656_v31  ;;  %v3081_v31 = vld [vmem:[%s5053_s20] sm:$0xff] }
 0x7c0   : > { %3840 = vmatprep.subr.mxu0 %v4533_v16 }
 0x7c5   : > { %v4067_v32 = vpop.eup %4066 }
 0x7c6   : > { %3828 = vmatmul.mubr.msk.f32.vlgmr.msra.gmra.mrb[22].mxu1 %vm1001_vm3, %v4067_v32  ;;  %v2413_v33 = vsel %vm1001_vm3, %v4067_v32, 0.0  ;;  %v3082_v32 = vld [vmem:[%s5053_s20 + $0x8] sm:$0xff] }
 0x7c7   : > { %2414 = vadd.xlane.f32.xlu0 %v2413_v33  ;;  %3836 = vmatpush3.msra.mxu1 %v5176_v0  ;;  %v3893_v33 = vpack.c.bf16 %v3082_v32, %v3081_v31 }
 0x7c8   : > { %3837 = vmatprep.mubr.msk.f32.mxu1 %vm4534_vm2, %v4533_v16  ;;  %3845 = vmatprep.subr.mxu1 %v4533_v16 }
 0x7c9   : > { %v4069_v35 = vpop.eup %4068 }
 0x7ca   : > { %3833 = vmatmul.mubr.msk.f32.vlgmr.msra.gmra.mrb[16].mxu0 %vm1001_vm3, %v4069_v35  ;;  %v2416_v37 = vsel %vm1001_vm3, %v4069_v35, 0.0 }
 0x7cb   : > { %3039 = vadd.xlane.f32.xlu0 %v3038_v36  ;;  %2417 = vadd.xlane.f32.xlu1 %v2416_v37  ;;  %v3175_v36 = vld [vmem:[%s5061_s7] sm:$0xff]  ;;  %v3176_v37 = vld [vmem:[%s5061_s7 + $0x8] sm:$0xff] }
 0x7cc   : > { %3841 = vmatpush3.msra.mxu0 %v5191_v5  ;;  %3842 = vmatprep.mubr.msk.f32.mxu0 %vm4534_vm2, %v4533_v16 }
 0x7cd   : > { %3850 = vmatprep.subr.mxu0 %v4533_v16 }
 0x81f   : > { %v2409_v38 = vpop.xlane.xlu1 %2408 }
 0x820   : > { %4070 = vrcp.f32 %v2409_v38  ;;  %v3178_v38 = vld [vmem:[%s5061_s7 + $0x18] sm:$0xff] }
 0x824   : > { %v2412_v7 = vpop.xlane.xlu0 %2411 }
 0x825   : > { %4072 = vrcp.f32 %v2412_v7  ;;  %v3177_v7 = vld [vmem:[%s5061_s7 + $0x10] sm:$0xff] }
 0x82a   : > { %v4071_v44 = vpop.eup %4070 }
 0x82f   : > { %v4073_v47 = vpop.eup %4072 }
 0x854   : > { %v2415_v0 = vpop.xlane.xlu0 %2414 }
 0x855   : > { %4074 = vrcp.f32 %v2415_v0  ;;  %v3901_v0 = vpack.c.bf16 %v3176_v37, %v3175_v36 }
 0x858   : > { %v3040_v39 = vpop.xlane.xlu0 %3039  ;;  %v2418_v51 = vpop.xlane.xlu1 %2417 }
 0x859   : > { %v3045_v40 = vmul.f32 0.03125, %v3040_v39  ;;  %4076 = vrcp.f32 %v2418_v51  ;;  %v3905_v39 = vpack.c.bf16 %v3178_v38, %v3177_v7 }
 0x85b   : > { %v3047_v41 = vsub.f32 %v3034_v34, %v3045_v40  ;;  %v3084_v34 = vld [vmem:[%s5053_s20 + $0x18] sm:$0xff]  ;;  %v3179_v40 = vld [vmem:[%s5061_s7 + $0x20] sm:$0xff] }
 0x85d   : > { %v3049_v42 = vmul.f32 %v3047_v41, %v3047_v41 }
 0x85f   : > { %v3051_v43 = vsel %vm759_vm1, %v3049_v42, 0.0  ;;  %v4075_v52 = vpop.eup %4074 }
 0x860   : > { %3052 = vadd.xlane.f32.xlu0 %v3051_v43 }
 0x863   : > { %v4077_v55 = vpop.eup %4076 }
 0x864   : > { %v2499_v45 = vpop.f32.mrb[20].mxu1 }
 0x865   : > { %v2731_v5 = vmul.f32 %v4071_v44, %v2499_v45  ;;  %v3819_v46 = vpop.f32.mrb[21].mxu1 }
 0x867   : > { %3838 = vmatmul.mubr.msk.f32.vlgmr.msra.gmra.mrb[24].mxu1 %vm1001_vm3, %v2731_v5 }
 0x868   : > { %3846 = vmatpush3.msra.mxu1 %v5196_v19  ;;  %3847 = vmatprep.mubr.msk.f32.mxu1 %vm4534_vm2, %v4533_v16 }
 0x869   : > { %v2575_v48 = vpop.f32.mrb[14].mxu0  ;;  %3894 = vmatprep.subr.bf16.mxu1 %v3893_v33 }
 0x86a   : > { %v2732_v49 = vmul.f32 %v4073_v47, %v2575_v48  ;;  %v3824_v50 = vpop.f32.mrb[15].mxu0 }
 0x86b   : > { %v3182_v50 = vld [vmem:[%s5061_s7 + $0x38] sm:$0xff] }
 0x86c   : > { %3843 = vmatmul.mubr.msk.f32.vlgmr.msra.gmra.mrb[18].mxu0 %vm1001_vm3, %v2732_v49  ;;  %v3181_v49 = vld [vmem:[%s5061_s7 + $0x30] sm:$0xff] }
 0x86d   : > { %3851 = vmatpush3.msra.mxu0 %v5206_v27  ;;  %3852 = vmatprep.mubr.msk.f32.mxu0 %vm4534_vm2, %v4533_v16  ;;  %v3913_v51 = vpack.c.bf16 %v3182_v50, %v3181_v49 }
 0x86e   : > { %3902 = vmatprep.subr.bf16.mxu0 %v3901_v0 }
 0x899   : > { %v2651_v19 = vpop.f32.mrb[22].mxu1 }
 0x89a   : > { %v2733_v53 = vmul.f32 %v4075_v52, %v2651_v19  ;;  %v3829_v54 = vpop.f32.mrb[23].mxu1  ;;  %v3638_v52 = vld [vmem:[%s636_s1] ss:$0 sm:$0xff] }
 0x89c   : > { %3848 = vmatmul.mubr.msk.f32.vlgmr.msra.gmra.mrb[26].mxu1 %vm1001_vm3, %v2733_v53 }
 0x89d   : > { %v2727_v56 = vpop.f32.mrb[16].mxu0  ;;  %3896 = vmatpush3.bf16.msra.mxu1 %v3893_v33 }
 0x89e   : > { %v2734_v57 = vmul.f32 %v4077_v55, %v2727_v56  ;;  %v3834_v58 = vpop.f32.mrb[17].mxu0 }
 0x89f   : > { %v3641_v58 = vld [vmem:[%s653_s13] ss:$0 sm:$0xff] }
 0x8a0   : > { %3853 = vmatmul.mubr.msk.f32.vlgmr.msra.gmra.mrb[20].mxu0 %vm1001_vm3, %v2734_v57 }
 0x8a1   : > { %3904 = vmatpush3.bf16.msra.mxu0 %v3901_v0 }
 0x8a2   : > { %3906 = vmatprep.subr.bf16.mxu0 %v3905_v39 }
 0x8a5   : > { %3908 = vmatpush3.bf16.msra.mxu0 %v3905_v39 }
 0x8ed   : > { %v3053_v27 = vpop.xlane.xlu0 %3052 }
 0x8ee   : > { %v3057_v61 = vmul.f32 0.03125, %v3053_v27 }
 0x8f0   : > { %v3059_v16 = vadd.f32 1e-05, %v3057_v61 }
 0x8f2   : > { %4078 = vrsqrt.f32 %v3059_v16 }
 0x8fc   : > { %v4079_v63 = vpop.eup %4078 }
 0x8fd   : > { %v3063_v2 = vmul.f32 %v4079_v63, %v3047_v41  ;;  %v3180_v41 = vld [vmem:[%s5061_s7 + $0x28] sm:$0xff] }
 0x8fe   : > { %v3909_v42 = vpack.c.bf16 %v3180_v41, %v3179_v40 }
 0x8ff   : > { %v3071_v4 = vmul.f32 %v3636_v1, %v3063_v2 }
 0x900   : > { %3910 = vmatprep.subr.bf16.mxu0 %v3909_v42 }
 0x901   : > { %v5290_v6 = vadd.f32 %v3637_v3, %v3071_v4  ;;  %3912 = vmatpush3.bf16.msra.mxu0 %v3909_v42 }
 0x902   : > { %3914 = vmatprep.subr.bf16.mxu0 %v3913_v51 }
 0x903   : > { %3863 = vmatprep.mubr.msk.f32.mxu1 %vm759_vm1, %v5290_v6 }
 0x905   : > { %3916 = vmatpush3.bf16.msra.mxu0 %v3913_v51 }
 0x93a   : > { %v2804_v8 = vpop.f32.mrb[24].mxu1 }
 0x93b   : > { %v3839_v11 = vpop.f32.mrb[25].mxu1  ;;  %v3027_v13 = vsel %vm759_vm1, %v2804_v8, 0.0 }
 0x93f   : > { %v2877_v12 = vpop.f32.mrb[18].mxu0 }
 0x940   : > { %v3028_v14 = vsel %vm759_vm1, %v2877_v12, 0.0  ;;  %v3844_v15 = vpop.f32.mrb[19].mxu0 }
 0x941   : > { %v3029_v17 = vadd.f32 %v3028_v14, %v3027_v13 }
 0x96f   : > { %v2950_v18 = vpop.f32.mrb[26].mxu1 }
 0x970   : > { %v3030_v20 = vsel %vm759_vm1, %v2950_v18, 0.0  ;;  %v3849_v21 = vpop.f32.mrb[27].mxu1 }
 0x971   : > { %v3031_v60 = vadd.f32 %v3030_v20, %v3029_v17 }
 0x973   : > { %v3023_v59 = vpop.f32.mrb[20].mxu0 }
 0x974   : > { %v3032_v22 = vsel %vm759_vm1, %v3023_v59, 0.0  ;;  %v3854_v23 = vpop.f32.mrb[21].mxu0 }
 0x975   : > { %v3033_v62 = vadd.f32 %v3032_v22, %v3031_v60 }
 0x977   : > { %v3035_v24 = vadd.f32 %v3033_v62, %v5083_v9  ;;  %v3083_v9 = vld [vmem:[%s5053_s20 + $0x10] sm:$0xff] }
 0x978   : > { %v3897_v35 = vpack.c.bf16 %v3084_v34, %v3083_v9 }
 0x979   : > { %v3041_v25 = vsel %vm759_vm1, %v3035_v24, 0.0 }
 0x97a   : > { %3042 = vadd.xlane.f32.xlu1 %v3041_v25  ;;  %3898 = vmatprep.subr.bf16.mxu1 %v3897_v35  ;;  %v3644_v25 = vld [vmem:[%s661_s16] ss:$0 sm:$0xff] }
 0x97b   : > { %3900 = vmatpush3.bf16.msra.mxu1 %v3897_v35 }
 0xa07   : > { %v3043_v26 = vpop.xlane.xlu1 %3042 }
 0xa08   : > { %v3046_v28 = vmul.f32 0.03125, %v3043_v26 }
 0xa0a   : > { %v3048_v29 = vsub.f32 %v3035_v24, %v3046_v28 }
 0xa0c   : > { %v3050_v10 = vmul.f32 %v3048_v29, %v3048_v29 }
 0xa0e   : > { %v3054_v30 = vsel %vm759_vm1, %v3050_v10, 0.0  ;;  %v3645_v10 = vld [vmem:[%s669_s8] ss:$0 sm:$0xff] }
 0xa0f   : > { %3055 = vadd.xlane.f32.xlu1 %v3054_v30 }
 0xa9c   : > { %v3056_v43 = vpop.xlane.xlu1 %3055 }
 0xa9d   : > { %v3058_v44 = vmul.f32 0.03125, %v3056_v43 }
 0xa9f   : > { %v3060_v45 = vadd.f32 1e-05, %v3058_v44 }
 0xaa1   : > { %4080 = vrsqrt.f32 %v3060_v45 }
 0xaab   : > { %v4081_v5 = vpop.eup %4080 }
 0xaac   : > { %v3064_v46 = vmul.f32 %v4081_v5, %v3048_v29 }
 0xaae   : > { %v3072_v47 = vmul.f32 %v3636_v1, %v3064_v46 }
 0xab0   : > { %v3080_v48 = vadd.f32 %v3637_v3, %v3072_v47 }
 0xab2   : > { %3864 = vmatmul.mubr.msk.f32.vlgmr.msra.gmra.mrb[28].mxu1 %vm759_vm1, %v3080_v48 }
 0xb85   : > { %v3865_v19 = vpop.f32.mrb[28].mxu1 }
 0xb86   : > { %v3170_v53 = vadd.f32 %v3865_v19, %v3638_v52  ;;  %v3164_v54 = vpop.f32.mrb[29].mxu1 }
 0xb87   : > { %v3165_v55 = vadd.f32 %v3638_v52, %v3164_v54 }
 0xb88   : > { %v3174_v57 = vmax.f32 %v3170_v53, 0.0 }
 0xb89   : > { %v3173_v56 = vmax.f32 %v3165_v55, 0.0 }
 0xb8b   : > { %3882 = vmatprep.mubr.msk.f32.mxu0 %vm3190_vm4, %v3173_v56 }
 0xb8c   : > { %3883 = vmatmul.mubr.msk.f32.vlgmr.msra.gmra.mrb[22].mxu0 %vm3190_vm4, %v3174_v57 }
 0xc5f   : > { %v3884_v27 = vpop.f32.mrb[22].mxu0 }
 0xc60   : > { %v3269_v61 = vadd.f32 %v3884_v27, %v3641_v58  ;;  %v3263_v16 = vpop.f32.mrb[23].mxu0 }
 0xc61   : > { %v3264_v63 = vadd.f32 %v3641_v58, %v3263_v16 }
 0xc62   : > { %v3273_v1 = vadd.f32 %v3269_v61, %v3080_v48 }
 0xc63   : > { %v3272_v2 = vadd.f32 %v3264_v63, %v5290_v6 }
 0xc64   : > { %v3279_v3 = vsel %vm759_vm1, %v3273_v1, 0.0 }
 0xc65   : > { %3280 = vadd.xlane.f32.xlu1 %v3279_v3  ;;  %v3276_v4 = vsel %vm759_vm1, %v3272_v2, 0.0 }
 0xc66   : > { %3277 = vadd.xlane.f32.xlu0 %v3276_v4 }
 0xcf2   : > { %v3281_v8 = vpop.xlane.xlu1 %3280 }
 0xcf3   : > { %v3283_v11 = vmul.f32 0.03125, %v3281_v8  ;;  %v3278_v12 = vpop.xlane.xlu0 %3277 }
 0xcf4   : > { %v3282_v13 = vmul.f32 0.03125, %v3278_v12 }
 0xcf5   : > { %v3285_v14 = vsub.f32 %v3273_v1, %v3283_v11 }
 0xcf6   : > { %v3284_v15 = vsub.f32 %v3272_v2, %v3282_v13 }
 0xcf7   : > { %v3287_v17 = vmul.f32 %v3285_v14, %v3285_v14 }
 0xcf8   : > { %v3286_v18 = vmul.f32 %v3284_v15, %v3284_v15 }
 0xcf9   : > { %v3291_v20 = vsel %vm759_vm1, %v3287_v17, 0.0 }
 0xcfa   : > { %3292 = vadd.xlane.f32.xlu1 %v3291_v20  ;;  %v3288_v6 = vsel %vm759_vm1, %v3286_v18, 0.0 }
 0xcfb   : > { %3289 = vadd.xlane.f32.xlu0 %v3288_v6 }
 0xd87   : > { %v3293_v21 = vpop.xlane.xlu1 %3292 }
 0xd88   : > { %v3295_v60 = vmul.f32 0.03125, %v3293_v21  ;;  %v3290_v59 = vpop.xlane.xlu0 %3289 }
 0xd89   : > { %v3294_v22 = vmul.f32 0.03125, %v3290_v59 }
 0xd8a   : > { %v3297_v23 = vadd.f32 1e-05, %v3295_v60 }
 0xd8b   : > { %v3296_v62 = vadd.f32 1e-05, %v3294_v22 }
 0xd8c   : > { %4082 = vrsqrt.f32 %v3297_v23 }
 0xd8d   : > { %4084 = vrsqrt.f32 %v3296_v62 }
 0xd96   : > { %v4083_v24 = vpop.eup %4082 }
 0xd97   : > { %v4085_v26 = vpop.eup %4084  ;;  %v3301_v28 = vmul.f32 %v4083_v24, %v3285_v14 }
 0xd98   : > { %v3300_v29 = vmul.f32 %v4085_v26, %v3284_v15 }
 0xd99   : > { %v3309_v30 = vmul.f32 %v3644_v25, %v3301_v28 }
 0xd9a   : > { %v3308_v31 = vmul.f32 %v3644_v25, %v3300_v29 }
 0xd9b   : > { %v3317_v32 = vadd.f32 %v3645_v10, %v3309_v30 }
 0xd9c   : > { %v3316_v33 = vadd.f32 %v3645_v10, %v3308_v31 }
 0xd9d   : > { %3319 = vst.msk [vmem:[#allocation20 + $0x8] sm:$0xff] %vm759_vm1, %v3317_v32 }
 0xd9e   : > { %3318 = vst.msk [vmem:[#allocation20] sm:$0xff] %vm759_vm1, %v3316_v33 }
 0xd9f   : > { %4427 = shalt.err (!%p4424_p8)
}
 0xda0   : > { %s5453_s3 = sld [smem:[#allocation41_spill]] }
 0xda6   : > { %s4428_s2 = scalar_lea.hbm %s5453_s3, 256 }
 0xda7   : > { %p4429_p13 = scmp.ne.s32.totalorder %s5453_s3, %s4428_s2  ;;  %p4434_p5 = scmp.lt.u32.totalorder %s4428_s2, %s5453_s3 }
 0xda9   : > { %p4430_p2 = pnand %p4429_p13, %p3983_p10 }
 0xdab   : > { %p4431_p6 = pneg %p4430_p2 }
 0xdad   : > { %p4436_p9 = pnand %p4434_p5, %p4431_p6 }
 0xdaf   : > { %4439 = shalt.err (!%p4436_p9)
}
 0xdb0   : > { %s4537_s7 = smov 128   ;;  %s4538_s13 = smov 8  }
 0xdb1   : > { %3942 = dma.vmem_to_hbm [thread:$0]  (%p3983_p10), %s3330_s26, 256, %s5453_s3, [#allocation4], %s4537_s7, %s4537_s7, %s4538_s13  }
 0xdb2   : > { %4489 = dma.done.wait (%p3983_p10), [#allocation4], 256  }
 0xdb3   : > { %4491 = vsyncadd (%p3983_p10), [#allocation4], 4294967040 }
 0xdb4 PF: > { %s38_s22 = sadd.s32 1, %s4514_s22   ;;  %s5454_s8 = sld [smem:[#allocation28_spill]] }
 0xdb5   : > { %p35_p3 = scmp.ge.s32.totalorder %s38_s22, 4   ;;  %s5455_s19 = sld [smem:[#allocation31_spill]] }
 0xdb6   : > { %s5456_s23 = sld [smem:[#allocation30_spill]]  ;;  %s5457_s17 = smov %s4498_s18 }
 0xdb7   : > { %s5459_s20 = smov %s4510_s21  ;;  %37 = sbr.rel (!%p35_p3) target bundleno = 25 (0x19), region = 219 }
 0xdba   : > { %s5458_s18 = smov %s5454_s8 }
 0xdbc   : > { %s5460_s21 = smov %s5456_s23 }
 0xdbe   :  { %3345 = vsyncpa [#allocation3], 1 }
 0xdbf   :  { %3347 = vsyncpa [#allocation3 + $0x1], 1 }
 0xdc0   :  { %3348 = vsyncpa [#allocation6], 1 }
 0xdc1   :  { %3350 = vsyncpa [#allocation6 + $0x1], 1 }
 0xdc2   :  { %3351 = vsyncpa [#allocation9], 1 }
 0xdc3   :  { %3353 = vsyncpa [#allocation9 + $0x1], 1 }
 0xdc4   :  { %3354 = vsyncpa [#allocation12], 1 }
 0xdc5   :  { %3356 = vsyncpa [#allocation12 + $0x1], 1 }
 0xdc6   :  { %3357 = vsyncpa [#allocation15], 1 }
 0xdc7   :  { %3359 = vsyncpa [#allocation15 + $0x1], 1 }
 0xdc8   :  { %3360 = vsyncpa [#allocation18], 1 }
 0xdc9   :  { %3362 = vsyncpa [#allocation18 + $0x1], 1 }
 0xdca   :  { %3363 = vsyncpa [#allocation4], 1 }
 0xdcb   :  { %3365 = vsyncpa [#allocation4 + $0x1], 1 }

</bundles_post_ra>
